<compile_context>
chip_gen: v6e
topology: v6e:2x2x1
jax: 0.10.0
libtpu: 0.0.40
codegen_flags: <defaults>
</compile_context>

<pallas_src>
import math
from functools import partial

import jax
import jax.numpy as jnp
from jax import lax
from jax.experimental import pallas as pl
from jax.experimental.pallas import tpu as pltpu

EPS = 1e-5
# Explicit scoped-VMEM limit; re-derive per chip (v7x: 64 MiB physical,
# v5e: 16 MiB scoped default). Toy shapes use only a few hundred KiB.
VMEM_LIMIT = 32 * 1024 * 1024


def _align_corners_table(n_in, n_out):
    """(i0, i1, frac) per output index for bilinear interp, align_corners=True."""
    tbl = []
    for p in range(n_out):
        src = 0.0 if n_out == 1 else p * (n_in - 1) / (n_out - 1)
        i0 = min(int(math.floor(src)), n_in - 1)
        i1 = min(i0 + 1, n_in - 1)
        tbl.append((i0, i1, float(src - i0)))
    return tbl


def _interp_matrix(n_in, n_out, pad_before, total_rows, lead):
    """(total_rows, n_in): row (lead+pad_before+p) holds the interp weights of
    upsampled output row p; all other rows are zero (= F.pad and, for lead=1,
    the 3x3-conv halo row)."""
    m = [[0.0] * n_in for _ in range(total_rows)]
    for p, (i0, i1, w) in enumerate(_align_corners_table(n_in, n_out)):
        r = lead + pad_before + p
        m[r][i0] += 1.0 - w
        m[r][i1] += w
    return jnp.asarray(m, jnp.float32)


def _band_weights(w_hwio, W):
    """Fold the dx taps (and W-direction zero padding) of a 3x3 conv into the
    contraction: returns (3, W*Ci, W*Co) with
      band[dy][w*Ci + c, q*Co + m] = w_hwio[dy, w-q+1, c, m]   (0 elsewhere).
    NOTE: dense band => ~W/3 wasted MXU FLOPs; fine at moderate W*C. For very
    wide rows switch to per-row im2col (K=3*Ci) or pltpu.roll shifts."""
    Ci, Co = w_hwio.shape[2], w_hwio.shape[3]
    mats = []
    for dy in range(3):
        m = jnp.zeros((W * Ci, W * Co), jnp.float32)
        for dx in range(3):
            m = m + jnp.kron(jnp.eye(W, k=1 - dx, dtype=jnp.float32),
                             w_hwio[dy, dx])
        mats.append(m)
    return jnp.stack(mats)


@partial(jax.jit, static_argnames=("use_bf16",))
def up_pallas(x1_nchw, x2_nchw, params, *, use_bf16=False):
    """Pallas implementation of Up.forward. Inputs/outputs are NCHW like PyTorch."""
    comp = jnp.bfloat16 if use_bf16 else jnp.float32

    x1 = jnp.transpose(x1_nchw, (0, 2, 3, 1)).astype(jnp.float32)  # NHWC
    x2 = jnp.transpose(x2_nchw, (0, 2, 3, 1)).astype(jnp.float32)  # NHWC
    B, H1, W1, C1 = x1.shape
    B2, H2, W2, C2 = x2.shape
    assert B == B2
    H1u, W1u = 2 * H1, 2 * W1
    diffY, diffX = H2 - H1u, W2 - W1u
    assert diffY >= 0 and diffX >= 0, "negative F.pad (crop) not supported"
    py0, px0 = diffY // 2, diffX // 2
    Hp = H2 + 2                       # +1 halo row top/bottom for the 3x3 convs

    w1, w2 = params["w1"], params["w2"]             # HWIO
    Cin = C1 + C2
    Cmid, Cout = w1.shape[-1], w2.shape[-1]
    assert w1.shape == (3, 3, Cin, Cmid) and w2.shape == (3, 3, Cmid, Cout)

    Lr1, Lx1, Lx2 = W1 * C1, W2 * C1, W2 * C2
    Lmid, Lout = W2 * Cmid, W2 * Cout

    # ---------------- host-built (glue) operands ----------------
    x1_flat = x1.reshape(B, H1, Lr1)                            # lane-dense rows
    x2_p = jnp.pad(x2.reshape(B, H2, Lx2), ((0, 0), (1, 1), (0, 0)))
    uh = _interp_matrix(H1, H1u, py0, Hp, 1)                    # (Hp, H1)
    uw = _interp_matrix(W1, W1u, px0, W2, 0)                    # (W2, W1)
    kw = jnp.kron(uw.T, jnp.eye(C1, dtype=jnp.float32))         # (W1*C1, W2*C1)
    # torch.cat([x2, x1], dim=1): split conv1 weights per channel group so the
    # concat is never materialized.
    w1a = _band_weights(w1[:, :, :C2, :], W2)                   # (3, Lx2, Lmid)
    w1b = _band_weights(w1[:, :, C2:, :], W2)                   # (3, Lx1, Lmid)
    w2b = _band_weights(w2, W2)                                 # (3, Lmid, Lout)
    # dy taps as (Hp, Hp) shift matrices (tiny MXU matmuls; no sublane slices).
    shifts = jnp.stack([jnp.eye(Hp, k=dy - 1, dtype=jnp.float32)
                        for dy in range(3)])                    # (3, Hp, Hp)
    cb1 = jnp.tile(params["cb1"], W2).reshape(1, Lmid)
    cb2 = jnp.tile(params["cb2"], W2).reshape(1, Lout)

    uh_c, kw_c = uh.astype(comp), kw.astype(comp)
    w1a_c, w1b_c, w2b_c = w1a.astype(comp), w1b.astype(comp), w2b.astype(comp)

    cparams = pltpu.CompilerParams(dimension_semantics=("parallel",),
                                   vmem_limit_bytes=VMEM_LIMIT)

    def row_mask(x):
        # zero the halo rows (r=0, r=Hp-1) so they act as conv padding and
        # contribute nothing to the BN partial sums.
        r = lax.broadcasted_iota(jnp.int32, x.shape, 0)
        return jnp.where((r >= 1) & (r <= H2), x, 0.0)

    # -------- pass 1: upsample + F.pad + conv1 + bias, partial BN1 stats ----
    def conv1_kernel(x1_ref, x2_ref, uh_ref, kw_ref, wa_ref, wb_ref, s_ref,
                     cb_ref, y1_ref, st_ref):
        # bilinear upsample (align_corners=True) + pad + halo as two matmuls
        t = jnp.dot(uh_ref[...], x1_ref[0].astype(comp),
                    preferred_element_type=jnp.float32)          # (Hp, W1*C1)
        xu = jnp.dot(t.astype(comp), kw_ref[...],
                     preferred_element_type=jnp.float32)         # (Hp, W2*C1)
        x2p = x2_ref[0]                                          # (Hp, W2*C2)
        xu_c, x2p_c = xu.astype(comp), x2p.astype(comp)
        acc = jnp.zeros((Hp, Lmid), jnp.float32)
        for dy in range(3):                                      # 3 dy taps
            z = jnp.dot(x2p_c, wa_ref[dy], preferred_element_type=jnp.float32)
            z = z + jnp.dot(xu_c, wb_ref[dy], preferred_element_type=jnp.float32)
            acc = acc + jnp.dot(s_ref[dy], z, preferred_element_type=jnp.float32)
        y1 = row_mask(acc + cb_ref[...])
        y1_ref[0] = y1
        st_ref[0, 0:1, :] = jnp.sum(y1, axis=0, keepdims=True)
        st_ref[0, 1:2, :] = jnp.sum(y1 * y1, axis=0, keepdims=True)

    y1_p, st1 = pl.pallas_call(
        conv1_kernel,
        grid=(B,),
        in_specs=[
            pl.BlockSpec((1, H1, Lr1), lambda b: (b, 0, 0)),
            pl.BlockSpec((1, Hp, Lx2), lambda b: (b, 0, 0)),
            pl.BlockSpec((Hp, H1), lambda b: (0, 0)),
            pl.BlockSpec((Lr1, Lx1), lambda b: (0, 0)),
            pl.BlockSpec((3, Lx2, Lmid), lambda b: (0, 0, 0)),
            pl.BlockSpec((3, Lx1, Lmid), lambda b: (0, 0, 0)),
            pl.BlockSpec((3, Hp, Hp), lambda b: (0, 0, 0)),
            pl.BlockSpec((1, Lmid), lambda b: (0, 0)),
        ],
        out_specs=[
            pl.BlockSpec((1, Hp, Lmid), lambda b: (b, 0, 0)),
            pl.BlockSpec((1, 2, Lmid), lambda b: (b, 0, 0)),
        ],
        out_shape=(jax.ShapeDtypeStruct((B, Hp, Lmid), jnp.float32),
                   jax.ShapeDtypeStruct((B, 2, Lmid), jnp.float32)),
        compiler_params=cparams,
    )(x1_flat, x2_p, uh_c, kw_c, w1a_c, w1b_c, shifts, cb1)

    n_px = float(B * H2 * W2)

    def bn_affine(stats, gamma, beta, C):
        # finalize global (cross-tile) BN batch stats from per-batch partials
        tot = jnp.sum(stats, axis=0).reshape(2, W2, C).sum(axis=1)   # (2, C)
        mu = tot[0] / n_px
        var = tot[1] / n_px - mu * mu          # biased variance (training BN)
        scale = gamma * lax.rsqrt(var + EPS)
        shift = beta - mu * scale
        return (jnp.tile(scale, W2).reshape(1, W2 * C),
                jnp.tile(shift, W2).reshape(1, W2 * C))

    sc1, sh1 = bn_affine(st1, params["g1"], params["bt1"], Cmid)

    # -------- pass 2: BN1 + ReLU + conv2 + bias, partial BN2 stats ----------
    def conv2_kernel(y1_ref, sc_ref, sh_ref, w_ref, s_ref, cb_ref,
                     y2_ref, st_ref):
        h1 = row_mask(jnp.maximum(y1_ref[0] * sc_ref[...] + sh_ref[...], 0.0))
        h1c = h1.astype(comp)
        acc = jnp.zeros((Hp, Lout), jnp.float32)
        for dy in range(3):
            z = jnp.dot(h1c, w_ref[dy], preferred_element_type=jnp.float32)
            acc = acc + jnp.dot(s_ref[dy], z, preferred_element_type=jnp.float32)
        y2 = row_mask(acc + cb_ref[...])
        y2_ref[0] = y2
        st_ref[0, 0:1, :] = jnp.sum(y2, axis=0, keepdims=True)
        st_ref[0, 1:2, :] = jnp.sum(y2 * y2, axis=0, keepdims=True)

    y2_p, st2 = pl.pallas_call(
        conv2_kernel,
        grid=(B,),
        in_specs=[
            pl.BlockSpec((1, Hp, Lmid), lambda b: (b, 0, 0)),
            pl.BlockSpec((1, Lmid), lambda b: (0, 0)),
            pl.BlockSpec((1, Lmid), lambda b: (0, 0)),
            pl.BlockSpec((3, Lmid, Lout), lambda b: (0, 0, 0)),
            pl.BlockSpec((3, Hp, Hp), lambda b: (0, 0, 0)),
            pl.BlockSpec((1, Lout), lambda b: (0, 0)),
        ],
        out_specs=[
            pl.BlockSpec((1, Hp, Lout), lambda b: (b, 0, 0)),
            pl.BlockSpec((1, 2, Lout), lambda b: (b, 0, 0)),
        ],
        out_shape=(jax.ShapeDtypeStruct((B, Hp, Lout), jnp.float32),
                   jax.ShapeDtypeStruct((B, 2, Lout), jnp.float32)),
        compiler_params=cparams,
    )(y1_p, sc1, sh1, w2b_c, shifts, cb2)

    sc2, sh2 = bn_affine(st2, params["g2"], params["bt2"], Cout)

    # -------- pass 3: BN2 + ReLU --------------------------------------------
    def bn_relu_kernel(y2_ref, sc_ref, sh_ref, o_ref):
        o_ref[0] = jnp.maximum(y2_ref[0] * sc_ref[...] + sh_ref[...], 0.0)

    out_p = pl.pallas_call(
        bn_relu_kernel,
        grid=(B,),
        in_specs=[
            pl.BlockSpec((1, Hp, Lout), lambda b: (b, 0, 0)),
            pl.BlockSpec((1, Lout), lambda b: (0, 0)),
            pl.BlockSpec((1, Lout), lambda b: (0, 0)),
        ],
        out_specs=pl.BlockSpec((1, Hp, Lout), lambda b: (b, 0, 0)),
        out_shape=jax.ShapeDtypeStruct((B, Hp, Lout), jnp.float32),
        compiler_params=cparams,
    )(y2_p, sc2, sh2)

    out = out_p[:, 1:1 + H2, :].reshape(B, H2, W2, Cout)
    return jnp.transpose(out, (0, 3, 1, 2))       # back to NCHW


def up_reference(x1_nchw, x2_nchw, params):
    """Pure-JAX (XLA) reference with identical semantics, for validation."""
    x1 = jnp.transpose(x1_nchw, (0, 2, 3, 1)).astype(jnp.float32)
    x2 = jnp.transpose(x2_nchw, (0, 2, 3, 1)).astype(jnp.float32)
    B, H1, W1, C1 = x1.shape
    _, H2, W2, C2 = x2.shape
    H1u, W1u = 2 * H1, 2 * W1
    diffY, diffX = H2 - H1u, W2 - W1u
    py0, px0 = diffY // 2, diffX // 2
    Uh = _interp_matrix(H1, H1u, 0, H1u, 0)
    Uw = _interp_matrix(W1, W1u, 0, W1u, 0)
    xu = jnp.einsum('ph,bhwc->bpwc', Uh, x1)
    xu = jnp.einsum('qw,bpwc->bpqc', Uw, xu)
    xu = jnp.pad(xu, ((0, 0), (py0, diffY - py0), (px0, diffX - px0), (0, 0)))
    x = jnp.concatenate([x2, xu], axis=-1)

    def conv_bn_relu(x, w, b, g, bt):
        y = lax.conv_general_dilated(
            x, w, window_strides=(1, 1), padding=((1, 1), (1, 1)),
            dimension_numbers=('NHWC', 'HWIO', 'NHWC')) + b.reshape(1, 1, 1, -1)
        mu = jnp.mean(y, axis=(0, 1, 2), keepdims=True)
        var = jnp.mean((y - mu) ** 2, axis=(0, 1, 2), keepdims=True)
        return jnp.maximum((y - mu) * lax.rsqrt(var + EPS) * g.reshape(1, 1, 1, -1)
                           + bt.reshape(1, 1, 1, -1), 0.0)

    h = conv_bn_relu(x, params["w1"], params["cb1"], params["g1"], params["bt1"])
    out = conv_bn_relu(h, params["w2"], params["cb2"], params["g2"], params["bt2"])
    return jnp.transpose(out, (0, 3, 1, 2))


if __name__ == "__main__":
    # Up(in_channels=8, out_channels=4, bilinear=True), UNet convention:
    # x1 (decoder) has in_channels//2 channels, x2 (skip) has in_channels//2.
    B = 2
    in_channels, out_channels = 8, 4
    C1 = in_channels // 2      # x1 channels
    C2 = in_channels - C1      # x2 channels
    Cmid = in_channels // 2    # DoubleConv mid_channels
    Cin = in_channels
    H1 = W1 = 8                # x1 spatial (upsampled -> 16)
    H2 = W2 = 16               # x2 spatial

    key = jax.random.PRNGKey(0)
    ks = jax.random.split(key, 10)
    params = {
        "w1": jax.random.normal(ks[0], (3, 3, Cin, Cmid), jnp.float32)
              * (1.0 / (9 * Cin)) ** 0.5,
        "cb1": 0.1 * jax.random.normal(ks[1], (Cmid,), jnp.float32),
        "g1": 1.0 + 0.1 * jax.random.normal(ks[2], (Cmid,), jnp.float32),
        "bt1": 0.1 * jax.random.normal(ks[3], (Cmid,), jnp.float32),
        "w2": jax.random.normal(ks[4], (3, 3, Cmid, out_channels), jnp.float32)
              * (1.0 / (9 * Cmid)) ** 0.5,
        "cb2": 0.1 * jax.random.normal(ks[5], (out_channels,), jnp.float32),
        "g2": 1.0 + 0.1 * jax.random.normal(ks[6], (out_channels,), jnp.float32),
        "bt2": 0.1 * jax.random.normal(ks[7], (out_channels,), jnp.float32),
    }
    x1 = jax.random.normal(ks[8], (B, C1, H1, W1), jnp.float32)   # NCHW
    x2 = jax.random.normal(ks[9], (B, C2, H2, W2), jnp.float32)   # NCHW

    out = jax.block_until_ready(up_pallas(x1, x2, params))
    ref = jax.block_until_ready(up_reference(x1, x2, params))
    assert out.shape == (B, out_channels, H2, W2), out.shape
    assert jnp.allclose(out, ref, rtol=2e-3, atol=2e-3), "mismatch vs JAX reference"
    print("KERNEL_OK")
</pallas_src>

<mosaic_0001>
module attributes {stable_mosaic.version = 11 : i64} {
  func.func @conv1_kernel(%arg0: i32, %arg1: memref<1x8x32xf32, #tpu.memory_space<vmem>>, %arg2: memref<1x18x64xf32, #tpu.memory_space<vmem>>, %arg3: memref<18x8xf32, #tpu.memory_space<vmem>>, %arg4: memref<32x64xf32, #tpu.memory_space<vmem>>, %arg5: memref<3x64x64xf32, #tpu.memory_space<vmem>>, %arg6: memref<3x64x64xf32, #tpu.memory_space<vmem>>, %arg7: memref<3x18x18xf32, #tpu.memory_space<vmem>>, %arg8: memref<1x64xf32, #tpu.memory_space<vmem>>, %arg9: memref<1x18x64xf32, #tpu.memory_space<vmem>>, %arg10: memref<1x2x64xf32, #tpu.memory_space<vmem>>) attributes {dimension_semantics = [#tpu.dimension_semantics<parallel>], iteration_bounds = array<i64: 2>, scalar_prefetch = 0 : i64, scratch_operands = 0 : i64, tpu.core_type = #tpu.core_type<tc>, window_params = [{transform_indices = @transform_0, window_bounds = array<i64: 1, 8, 32>}, {transform_indices = @transform_1, window_bounds = array<i64: 1, 18, 64>}, {pipeline_mode = #tpu.pipeline_mode<synchronous>, transform_indices = @transform_2, window_bounds = array<i64: 18, 8>}, {pipeline_mode = #tpu.pipeline_mode<synchronous>, transform_indices = @transform_3, window_bounds = array<i64: 32, 64>}, {pipeline_mode = #tpu.pipeline_mode<synchronous>, transform_indices = @transform_4, window_bounds = array<i64: 3, 64, 64>}, {pipeline_mode = #tpu.pipeline_mode<synchronous>, transform_indices = @transform_5, window_bounds = array<i64: 3, 64, 64>}, {pipeline_mode = #tpu.pipeline_mode<synchronous>, transform_indices = @transform_6, window_bounds = array<i64: 3, 18, 18>}, {pipeline_mode = #tpu.pipeline_mode<synchronous>, transform_indices = @transform_7, window_bounds = array<i64: 1, 64>}, {transform_indices = @transform_8, window_bounds = array<i64: 1, 18, 64>}, {transform_indices = @transform_9, window_bounds = array<i64: 1, 2, 64>}]} {
    %c0 = arith.constant 0 : index
    %c0_0 = arith.constant 0 : index
    %0 = vector.load %arg3[%c0, %c0_0] : memref<18x8xf32, #tpu.memory_space<vmem>>, vector<18x8xf32>
    %c0_1 = arith.constant 0 : index
    %c0_2 = arith.constant 0 : index
    %c0_3 = arith.constant 0 : index
    %1 = vector.load %arg1[%c0_1, %c0_2, %c0_3] : memref<1x8x32xf32, #tpu.memory_space<vmem>>, vector<1x8x32xf32>
    %2 = vector.shape_cast %1 : vector<1x8x32xf32> to vector<8x32xf32>
    %cst = arith.constant dense<0.000000e+00> : vector<18x32xf32>
    %3 = tpu.matmul %0, %2, %cst {dimension_numbers = #tpu.dot_dimension_numbers<[1], [0], [0], [1], [0, 0, 1, 1], [], []>} : vector<18x8xf32>, vector<8x32xf32>, vector<18x32xf32> -> vector<18x32xf32>
    %c0_4 = arith.constant 0 : index
    %c0_5 = arith.constant 0 : index
    %4 = vector.load %arg4[%c0_4, %c0_5] : memref<32x64xf32, #tpu.memory_space<vmem>>, vector<32x64xf32>
    %cst_6 = arith.constant dense<0.000000e+00> : vector<18x64xf32>
    %5 = tpu.matmul %3, %4, %cst_6 {dimension_numbers = #tpu.dot_dimension_numbers<[1], [0], [0], [1], [0, 0, 1, 1], [], []>} : vector<18x32xf32>, vector<32x64xf32>, vector<18x64xf32> -> vector<18x64xf32>
    %c0_7 = arith.constant 0 : index
    %c0_8 = arith.constant 0 : index
    %c0_9 = arith.constant 0 : index
    %6 = vector.load %arg2[%c0_7, %c0_8, %c0_9] : memref<1x18x64xf32, #tpu.memory_space<vmem>>, vector<1x18x64xf32>
    %7 = vector.shape_cast %6 : vector<1x18x64xf32> to vector<18x64xf32>
    %cst_10 = arith.constant 0.000000e+00 : f32
    %8 = vector.broadcast %cst_10 : f32 to vector<18x64xf32>
    %c0_11 = arith.constant 0 : index
    %c0_12 = arith.constant 0 : index
    %c0_13 = arith.constant 0 : index
    %9 = vector.load %arg5[%c0_11, %c0_12, %c0_13] : memref<3x64x64xf32, #tpu.memory_space<vmem>>, vector<1x64x64xf32>
    %10 = vector.shape_cast %9 : vector<1x64x64xf32> to vector<64x64xf32>
    %cst_14 = arith.constant dense<0.000000e+00> : vector<18x64xf32>
    %11 = tpu.matmul %7, %10, %cst_14 {dimension_numbers = #tpu.dot_dimension_numbers<[1], [0], [0], [1], [0, 0, 1, 1], [], []>} : vector<18x64xf32>, vector<64x64xf32>, vector<18x64xf32> -> vector<18x64xf32>
    %c0_15 = arith.constant 0 : index
    %c0_16 = arith.constant 0 : index
    %c0_17 = arith.constant 0 : index
    %12 = vector.load %arg6[%c0_15, %c0_16, %c0_17] : memref<3x64x64xf32, #tpu.memory_space<vmem>>, vector<1x64x64xf32>
    %13 = vector.shape_cast %12 : vector<1x64x64xf32> to vector<64x64xf32>
    %cst_18 = arith.constant dense<0.000000e+00> : vector<18x64xf32>
    %14 = tpu.matmul %5, %13, %cst_18 {dimension_numbers = #tpu.dot_dimension_numbers<[1], [0], [0], [1], [0, 0, 1, 1], [], []>} : vector<18x64xf32>, vector<64x64xf32>, vector<18x64xf32> -> vector<18x64xf32>
    %15 = arith.addf %11, %14 : vector<18x64xf32>
    %c0_19 = arith.constant 0 : index
    %c0_20 = arith.constant 0 : index
    %c0_21 = arith.constant 0 : index
    %16 = vector.load %arg7[%c0_19, %c0_20, %c0_21] : memref<3x18x18xf32, #tpu.memory_space<vmem>>, vector<1x18x18xf32>
    %17 = vector.shape_cast %16 : vector<1x18x18xf32> to vector<18x18xf32>
    %cst_22 = arith.constant dense<0.000000e+00> : vector<18x64xf32>
    %18 = tpu.matmul %17, %15, %cst_22 {dimension_numbers = #tpu.dot_dimension_numbers<[1], [0], [0], [1], [0, 0, 1, 1], [], []>} : vector<18x18xf32>, vector<18x64xf32>, vector<18x64xf32> -> vector<18x64xf32>
    %19 = arith.addf %8, %18 : vector<18x64xf32>
    %c1 = arith.constant 1 : index
    %c0_23 = arith.constant 0 : index
    %c0_24 = arith.constant 0 : index
    %20 = vector.load %arg5[%c1, %c0_23, %c0_24] : memref<3x64x64xf32, #tpu.memory_space<vmem>>, vector<1x64x64xf32>
    %21 = vector.shape_cast %20 : vector<1x64x64xf32> to vector<64x64xf32>
    %cst_25 = arith.constant dense<0.000000e+00> : vector<18x64xf32>
    %22 = tpu.matmul %7, %21, %cst_25 {dimension_numbers = #tpu.dot_dimension_numbers<[1], [0], [0], [1], [0, 0, 1, 1], [], []>} : vector<18x64xf32>, vector<64x64xf32>, vector<18x64xf32> -> vector<18x64xf32>
    %c1_26 = arith.constant 1 : index
    %c0_27 = arith.constant 0 : index
    %c0_28 = arith.constant 0 : index
    %23 = vector.load %arg6[%c1_26, %c0_27, %c0_28] : memref<3x64x64xf32, #tpu.memory_space<vmem>>, vector<1x64x64xf32>
    %24 = vector.shape_cast %23 : vector<1x64x64xf32> to vector<64x64xf32>
    %cst_29 = arith.constant dense<0.000000e+00> : vector<18x64xf32>
    %25 = tpu.matmul %5, %24, %cst_29 {dimension_numbers = #tpu.dot_dimension_numbers<[1], [0], [0], [1], [0, 0, 1, 1], [], []>} : vector<18x64xf32>, vector<64x64xf32>, vector<18x64xf32> -> vector<18x64xf32>
    %26 = arith.addf %22, %25 : vector<18x64xf32>
    %c1_30 = arith.constant 1 : index
    %c0_31 = arith.constant 0 : index
    %c0_32 = arith.constant 0 : index
    %27 = vector.load %arg7[%c1_30, %c0_31, %c0_32] : memref<3x18x18xf32, #tpu.memory_space<vmem>>, vector<1x18x18xf32>
    %28 = vector.shape_cast %27 : vector<1x18x18xf32> to vector<18x18xf32>
    %cst_33 = arith.constant dense<0.000000e+00> : vector<18x64xf32>
    %29 = tpu.matmul %28, %26, %cst_33 {dimension_numbers = #tpu.dot_dimension_numbers<[1], [0], [0], [1], [0, 0, 1, 1], [], []>} : vector<18x18xf32>, vector<18x64xf32>, vector<18x64xf32> -> vector<18x64xf32>
    %30 = arith.addf %19, %29 : vector<18x64xf32>
    %c2 = arith.constant 2 : index
    %c0_34 = arith.constant 0 : index
    %c0_35 = arith.constant 0 : index
    %31 = vector.load %arg5[%c2, %c0_34, %c0_35] : memref<3x64x64xf32, #tpu.memory_space<vmem>>, vector<1x64x64xf32>
    %32 = vector.shape_cast %31 : vector<1x64x64xf32> to vector<64x64xf32>
    %cst_36 = arith.constant dense<0.000000e+00> : vector<18x64xf32>
    %33 = tpu.matmul %7, %32, %cst_36 {dimension_numbers = #tpu.dot_dimension_numbers<[1], [0], [0], [1], [0, 0, 1, 1], [], []>} : vector<18x64xf32>, vector<64x64xf32>, vector<18x64xf32> -> vector<18x64xf32>
    %c2_37 = arith.constant 2 : index
    %c0_38 = arith.constant 0 : index
    %c0_39 = arith.constant 0 : index
    %34 = vector.load %arg6[%c2_37, %c0_38, %c0_39] : memref<3x64x64xf32, #tpu.memory_space<vmem>>, vector<1x64x64xf32>
    %35 = vector.shape_cast %34 : vector<1x64x64xf32> to vector<64x64xf32>
    %cst_40 = arith.constant dense<0.000000e+00> : vector<18x64xf32>
    %36 = tpu.matmul %5, %35, %cst_40 {dimension_numbers = #tpu.dot_dimension_numbers<[1], [0], [0], [1], [0, 0, 1, 1], [], []>} : vector<18x64xf32>, vector<64x64xf32>, vector<18x64xf32> -> vector<18x64xf32>
    %37 = arith.addf %33, %36 : vector<18x64xf32>
    %c2_41 = arith.constant 2 : index
    %c0_42 = arith.constant 0 : index
    %c0_43 = arith.constant 0 : index
    %38 = vector.load %arg7[%c2_41, %c0_42, %c0_43] : memref<3x18x18xf32, #tpu.memory_space<vmem>>, vector<1x18x18xf32>
    %39 = vector.shape_cast %38 : vector<1x18x18xf32> to vector<18x18xf32>
    %cst_44 = arith.constant dense<0.000000e+00> : vector<18x64xf32>
    %40 = tpu.matmul %39, %37, %cst_44 {dimension_numbers = #tpu.dot_dimension_numbers<[1], [0], [0], [1], [0, 0, 1, 1], [], []>} : vector<18x18xf32>, vector<18x64xf32>, vector<18x64xf32> -> vector<18x64xf32>
    %41 = arith.addf %30, %40 : vector<18x64xf32>
    %c0_45 = arith.constant 0 : index
    %c0_46 = arith.constant 0 : index
    %42 = vector.load %arg8[%c0_45, %c0_46] : memref<1x64xf32, #tpu.memory_space<vmem>>, vector<1x64xf32>
    %43 = vector.broadcast %42 : vector<1x64xf32> to vector<18x64xf32>
    %44 = arith.addf %41, %43 : vector<18x64xf32>
    %45 = tpu.iota {dimensions = array<i32: 0>} : vector<18x64xi32>
    %c1_i32 = arith.constant 1 : i32
    %46 = vector.broadcast %c1_i32 : i32 to vector<18x64xi32>
    %47 = arith.cmpi sge, %45, %46 : vector<18x64xi32>
    %c16_i32 = arith.constant 16 : i32
    %48 = vector.broadcast %c16_i32 : i32 to vector<18x64xi32>
    %49 = arith.cmpi sle, %45, %48 : vector<18x64xi32>
    %50 = arith.andi %47, %49 : vector<18x64xi1>
    %cst_47 = arith.constant 0.000000e+00 : f32
    %51 = vector.broadcast %cst_47 : f32 to vector<18x64xf32>
    %52 = arith.select %50, %44, %51 : vector<18x64xi1>, vector<18x64xf32>
    %c0_48 = arith.constant 0 : index
    %c0_49 = arith.constant 0 : index
    %c0_50 = arith.constant 0 : index
    %53 = vector.load %arg9[%c0_48, %c0_49, %c0_50] : memref<1x18x64xf32, #tpu.memory_space<vmem>>, vector<1x18x64xf32>
    %54 = vector.shape_cast %53 : vector<1x18x64xf32> to vector<18x64xf32>
    %55 = vector.shape_cast %52 : vector<18x64xf32> to vector<1x18x64xf32>
    tpu.vector_store %arg9[%c0_48, %c0_49, %c0_50], %55 {strides = array<i32>} : memref<1x18x64xf32, #tpu.memory_space<vmem>>, vector<1x18x64xf32>,
    %cst_51 = arith.constant dense<0.000000e+00> : vector<64xf32>
    %56 = vector.multi_reduction <add>, %52, %cst_51 [0] : vector<18x64xf32> to vector<64xf32>
    %57 = vector.shape_cast %56 : vector<64xf32> to vector<1x64xf32>
    %c0_52 = arith.constant 0 : index
    %c0_53 = arith.constant 0 : index
    %c0_54 = arith.constant 0 : index
    %58 = vector.load %arg10[%c0_52, %c0_53, %c0_54] : memref<1x2x64xf32, #tpu.memory_space<vmem>>, vector<1x1x64xf32>
    %59 = vector.shape_cast %58 : vector<1x1x64xf32> to vector<1x64xf32>
    %60 = vector.shape_cast %57 : vector<1x64xf32> to vector<1x1x64xf32>
    tpu.vector_store %arg10[%c0_52, %c0_53, %c0_54], %60 {strides = array<i32>} : memref<1x2x64xf32, #tpu.memory_space<vmem>>, vector<1x1x64xf32>,
    %61 = arith.mulf %52, %52 : vector<18x64xf32>
    %cst_55 = arith.constant dense<0.000000e+00> : vector<64xf32>
    %62 = vector.multi_reduction <add>, %61, %cst_55 [0] : vector<18x64xf32> to vector<64xf32>
    %63 = vector.shape_cast %62 : vector<64xf32> to vector<1x64xf32>
    %c0_56 = arith.constant 0 : index
    %c1_57 = arith.constant 1 : index
    %c0_58 = arith.constant 0 : index
    %64 = vector.load %arg10[%c0_56, %c1_57, %c0_58] : memref<1x2x64xf32, #tpu.memory_space<vmem>>, vector<1x1x64xf32>
    %65 = vector.shape_cast %64 : vector<1x1x64xf32> to vector<1x64xf32>
    %66 = vector.shape_cast %63 : vector<1x64xf32> to vector<1x1x64xf32>
    tpu.vector_store %arg10[%c0_56, %c1_57, %c0_58], %66 {strides = array<i32>} : memref<1x2x64xf32, #tpu.memory_space<vmem>>, vector<1x1x64xf32>,
    return
  }
  func.func @transform_0(%arg0: i32) -> (i32, i32, i32) {
    %c0_i32 = arith.constant 0 : i32
    %c0_i32_0 = arith.constant 0 : i32
    %c0_i32_1 = arith.constant 0 : i32
    return %arg0, %c0_i32, %c0_i32_0 : i32, i32, i32
  }
  func.func @transform_1(%arg0: i32) -> (i32, i32, i32) {
    %c0_i32 = arith.constant 0 : i32
    %c0_i32_0 = arith.constant 0 : i32
    %c0_i32_1 = arith.constant 0 : i32
    return %arg0, %c0_i32, %c0_i32_0 : i32, i32, i32
  }
  func.func @transform_2(%arg0: i32) -> (i32, i32) {
    %c0_i32 = arith.constant 0 : i32
    %c0_i32_0 = arith.constant 0 : i32
    %c0_i32_1 = arith.constant 0 : i32
    return %c0_i32, %c0_i32_0 : i32, i32
  }
  func.func @transform_3(%arg0: i32) -> (i32, i32) {
    %c0_i32 = arith.constant 0 : i32
    %c0_i32_0 = arith.constant 0 : i32
    %c0_i32_1 = arith.constant 0 : i32
    return %c0_i32, %c0_i32_0 : i32, i32
  }
  func.func @transform_4(%arg0: i32) -> (i32, i32, i32) {
    %c0_i32 = arith.constant 0 : i32
    %c0_i32_0 = arith.constant 0 : i32
    %c0_i32_1 = arith.constant 0 : i32
    %c0_i32_2 = arith.constant 0 : i32
    return %c0_i32, %c0_i32_0, %c0_i32_1 : i32, i32, i32
  }
  func.func @transform_5(%arg0: i32) -> (i32, i32, i32) {
    %c0_i32 = arith.constant 0 : i32
    %c0_i32_0 = arith.constant 0 : i32
    %c0_i32_1 = arith.constant 0 : i32
    %c0_i32_2 = arith.constant 0 : i32
    return %c0_i32, %c0_i32_0, %c0_i32_1 : i32, i32, i32
  }
  func.func @transform_6(%arg0: i32) -> (i32, i32, i32) {
    %c0_i32 = arith.constant 0 : i32
    %c0_i32_0 = arith.constant 0 : i32
    %c0_i32_1 = arith.constant 0 : i32
    %c0_i32_2 = arith.constant 0 : i32
    return %c0_i32, %c0_i32_0, %c0_i32_1 : i32, i32, i32
  }
  func.func @transform_7(%arg0: i32) -> (i32, i32) {
    %c0_i32 = arith.constant 0 : i32
    %c0_i32_0 = arith.constant 0 : i32
    %c0_i32_1 = arith.constant 0 : i32
    return %c0_i32, %c0_i32_0 : i32, i32
  }
  func.func @transform_8(%arg0: i32) -> (i32, i32, i32) {
    %c0_i32 = arith.constant 0 : i32
    %c0_i32_0 = arith.constant 0 : i32
    %c0_i32_1 = arith.constant 0 : i32
    return %arg0, %c0_i32, %c0_i32_0 : i32, i32, i32
  }
  func.func @transform_9(%arg0: i32) -> (i32, i32, i32) {
    %c0_i32 = arith.constant 0 : i32
    %c0_i32_0 = arith.constant 0 : i32
    %c0_i32_1 = arith.constant 0 : i32
    return %arg0, %c0_i32, %c0_i32_0 : i32, i32, i32
  }
}

module attributes {stable_mosaic.version = 11 : i64} {
  func.func @conv2_kernel(%arg0: i32, %arg1: memref<1x18x64xf32, #tpu.memory_space<vmem>>, %arg2: memref<1x64xf32, #tpu.memory_space<vmem>>, %arg3: memref<1x64xf32, #tpu.memory_space<vmem>>, %arg4: memref<3x64x64xf32, #tpu.memory_space<vmem>>, %arg5: memref<3x18x18xf32, #tpu.memory_space<vmem>>, %arg6: memref<1x64xf32, #tpu.memory_space<vmem>>, %arg7: memref<1x18x64xf32, #tpu.memory_space<vmem>>, %arg8: memref<1x2x64xf32, #tpu.memory_space<vmem>>) attributes {dimension_semantics = [#tpu.dimension_semantics<parallel>], iteration_bounds = array<i64: 2>, scalar_prefetch = 0 : i64, scratch_operands = 0 : i64, tpu.core_type = #tpu.core_type<tc>, window_params = [{transform_indices = @transform_0, window_bounds = array<i64: 1, 18, 64>}, {pipeline_mode = #tpu.pipeline_mode<synchronous>, transform_indices = @transform_1, window_bounds = array<i64: 1, 64>}, {pipeline_mode = #tpu.pipeline_mode<synchronous>, transform_indices = @transform_2, window_bounds = array<i64: 1, 64>}, {pipeline_mode = #tpu.pipeline_mode<synchronous>, transform_indices = @transform_3, window_bounds = array<i64: 3, 64, 64>}, {pipeline_mode = #tpu.pipeline_mode<synchronous>, transform_indices = @transform_4, window_bounds = array<i64: 3, 18, 18>}, {pipeline_mode = #tpu.pipeline_mode<synchronous>, transform_indices = @transform_5, window_bounds = array<i64: 1, 64>}, {transform_indices = @transform_6, window_bounds = array<i64: 1, 18, 64>}, {transform_indices = @transform_7, window_bounds = array<i64: 1, 2, 64>}]} {
    %c0 = arith.constant 0 : index
    %c0_0 = arith.constant 0 : index
    %c0_1 = arith.constant 0 : index
    %0 = vector.load %arg1[%c0, %c0_0, %c0_1] : memref<1x18x64xf32, #tpu.memory_space<vmem>>, vector<1x18x64xf32>
    %1 = vector.shape_cast %0 : vector<1x18x64xf32> to vector<18x64xf32>
    %c0_2 = arith.constant 0 : index
    %c0_3 = arith.constant 0 : index
    %2 = vector.load %arg2[%c0_2, %c0_3] : memref<1x64xf32, #tpu.memory_space<vmem>>, vector<1x64xf32>
    %3 = vector.broadcast %2 : vector<1x64xf32> to vector<18x64xf32>
    %4 = arith.mulf %1, %3 : vector<18x64xf32>
    %c0_4 = arith.constant 0 : index
    %c0_5 = arith.constant 0 : index
    %5 = vector.load %arg3[%c0_4, %c0_5] : memref<1x64xf32, #tpu.memory_space<vmem>>, vector<1x64xf32>
    %6 = vector.broadcast %5 : vector<1x64xf32> to vector<18x64xf32>
    %7 = arith.addf %4, %6 : vector<18x64xf32>
    %cst = arith.constant 0.000000e+00 : f32
    %8 = vector.broadcast %cst : f32 to vector<18x64xf32>
    %9 = arith.maximumf %7, %8 : vector<18x64xf32>
    %10 = tpu.iota {dimensions = array<i32: 0>} : vector<18x64xi32>
    %c1_i32 = arith.constant 1 : i32
    %11 = vector.broadcast %c1_i32 : i32 to vector<18x64xi32>
    %12 = arith.cmpi sge, %10, %11 : vector<18x64xi32>
    %c16_i32 = arith.constant 16 : i32
    %13 = vector.broadcast %c16_i32 : i32 to vector<18x64xi32>
    %14 = arith.cmpi sle, %10, %13 : vector<18x64xi32>
    %15 = arith.andi %12, %14 : vector<18x64xi1>
    %cst_6 = arith.constant 0.000000e+00 : f32
    %16 = vector.broadcast %cst_6 : f32 to vector<18x64xf32>
    %17 = arith.select %15, %9, %16 : vector<18x64xi1>, vector<18x64xf32>
    %cst_7 = arith.constant 0.000000e+00 : f32
    %18 = vector.broadcast %cst_7 : f32 to vector<18x64xf32>
    %c0_8 = arith.constant 0 : index
    %c0_9 = arith.constant 0 : index
    %c0_10 = arith.constant 0 : index
    %19 = vector.load %arg4[%c0_8, %c0_9, %c0_10] : memref<3x64x64xf32, #tpu.memory_space<vmem>>, vector<1x64x64xf32>
    %20 = vector.shape_cast %19 : vector<1x64x64xf32> to vector<64x64xf32>
    %cst_11 = arith.constant dense<0.000000e+00> : vector<18x64xf32>
    %21 = tpu.matmul %17, %20, %cst_11 {dimension_numbers = #tpu.dot_dimension_numbers<[1], [0], [0], [1], [0, 0, 1, 1], [], []>} : vector<18x64xf32>, vector<64x64xf32>, vector<18x64xf32> -> vector<18x64xf32>
    %c0_12 = arith.constant 0 : index
    %c0_13 = arith.constant 0 : index
    %c0_14 = arith.constant 0 : index
    %22 = vector.load %arg5[%c0_12, %c0_13, %c0_14] : memref<3x18x18xf32, #tpu.memory_space<vmem>>, vector<1x18x18xf32>
    %23 = vector.shape_cast %22 : vector<1x18x18xf32> to vector<18x18xf32>
    %cst_15 = arith.constant dense<0.000000e+00> : vector<18x64xf32>
    %24 = tpu.matmul %23, %21, %cst_15 {dimension_numbers = #tpu.dot_dimension_numbers<[1], [0], [0], [1], [0, 0, 1, 1], [], []>} : vector<18x18xf32>, vector<18x64xf32>, vector<18x64xf32> -> vector<18x64xf32>
    %25 = arith.addf %18, %24 : vector<18x64xf32>
    %c1 = arith.constant 1 : index
    %c0_16 = arith.constant 0 : index
    %c0_17 = arith.constant 0 : index
    %26 = vector.load %arg4[%c1, %c0_16, %c0_17] : memref<3x64x64xf32, #tpu.memory_space<vmem>>, vector<1x64x64xf32>
    %27 = vector.shape_cast %26 : vector<1x64x64xf32> to vector<64x64xf32>
    %cst_18 = arith.constant dense<0.000000e+00> : vector<18x64xf32>
    %28 = tpu.matmul %17, %27, %cst_18 {dimension_numbers = #tpu.dot_dimension_numbers<[1], [0], [0], [1], [0, 0, 1, 1], [], []>} : vector<18x64xf32>, vector<64x64xf32>, vector<18x64xf32> -> vector<18x64xf32>
    %c1_19 = arith.constant 1 : index
    %c0_20 = arith.constant 0 : index
    %c0_21 = arith.constant 0 : index
    %29 = vector.load %arg5[%c1_19, %c0_20, %c0_21] : memref<3x18x18xf32, #tpu.memory_space<vmem>>, vector<1x18x18xf32>
    %30 = vector.shape_cast %29 : vector<1x18x18xf32> to vector<18x18xf32>
    %cst_22 = arith.constant dense<0.000000e+00> : vector<18x64xf32>
    %31 = tpu.matmul %30, %28, %cst_22 {dimension_numbers = #tpu.dot_dimension_numbers<[1], [0], [0], [1], [0, 0, 1, 1], [], []>} : vector<18x18xf32>, vector<18x64xf32>, vector<18x64xf32> -> vector<18x64xf32>
    %32 = arith.addf %25, %31 : vector<18x64xf32>
    %c2 = arith.constant 2 : index
    %c0_23 = arith.constant 0 : index
    %c0_24 = arith.constant 0 : index
    %33 = vector.load %arg4[%c2, %c0_23, %c0_24] : memref<3x64x64xf32, #tpu.memory_space<vmem>>, vector<1x64x64xf32>
    %34 = vector.shape_cast %33 : vector<1x64x64xf32> to vector<64x64xf32>
    %cst_25 = arith.constant dense<0.000000e+00> : vector<18x64xf32>
    %35 = tpu.matmul %17, %34, %cst_25 {dimension_numbers = #tpu.dot_dimension_numbers<[1], [0], [0], [1], [0, 0, 1, 1], [], []>} : vector<18x64xf32>, vector<64x64xf32>, vector<18x64xf32> -> vector<18x64xf32>
    %c2_26 = arith.constant 2 : index
    %c0_27 = arith.constant 0 : index
    %c0_28 = arith.constant 0 : index
    %36 = vector.load %arg5[%c2_26, %c0_27, %c0_28] : memref<3x18x18xf32, #tpu.memory_space<vmem>>, vector<1x18x18xf32>
    %37 = vector.shape_cast %36 : vector<1x18x18xf32> to vector<18x18xf32>
    %cst_29 = arith.constant dense<0.000000e+00> : vector<18x64xf32>
    %38 = tpu.matmul %37, %35, %cst_29 {dimension_numbers = #tpu.dot_dimension_numbers<[1], [0], [0], [1], [0, 0, 1, 1], [], []>} : vector<18x18xf32>, vector<18x64xf32>, vector<18x64xf32> -> vector<18x64xf32>
    %39 = arith.addf %32, %38 : vector<18x64xf32>
    %c0_30 = arith.constant 0 : index
    %c0_31 = arith.constant 0 : index
    %40 = vector.load %arg6[%c0_30, %c0_31] : memref<1x64xf32, #tpu.memory_space<vmem>>, vector<1x64xf32>
    %41 = vector.broadcast %40 : vector<1x64xf32> to vector<18x64xf32>
    %42 = arith.addf %39, %41 : vector<18x64xf32>
    %43 = tpu.iota {dimensions = array<i32: 0>} : vector<18x64xi32>
    %c1_i32_32 = arith.constant 1 : i32
    %44 = vector.broadcast %c1_i32_32 : i32 to vector<18x64xi32>
    %45 = arith.cmpi sge, %43, %44 : vector<18x64xi32>
    %c16_i32_33 = arith.constant 16 : i32
    %46 = vector.broadcast %c16_i32_33 : i32 to vector<18x64xi32>
    %47 = arith.cmpi sle, %43, %46 : vector<18x64xi32>
    %48 = arith.andi %45, %47 : vector<18x64xi1>
    %cst_34 = arith.constant 0.000000e+00 : f32
    %49 = vector.broadcast %cst_34 : f32 to vector<18x64xf32>
    %50 = arith.select %48, %42, %49 : vector<18x64xi1>, vector<18x64xf32>
    %c0_35 = arith.constant 0 : index
    %c0_36 = arith.constant 0 : index
    %c0_37 = arith.constant 0 : index
    %51 = vector.load %arg7[%c0_35, %c0_36, %c0_37] : memref<1x18x64xf32, #tpu.memory_space<vmem>>, vector<1x18x64xf32>
    %52 = vector.shape_cast %51 : vector<1x18x64xf32> to vector<18x64xf32>
    %53 = vector.shape_cast %50 : vector<18x64xf32> to vector<1x18x64xf32>
    tpu.vector_store %arg7[%c0_35, %c0_36, %c0_37], %53 {strides = array<i32>} : memref<1x18x64xf32, #tpu.memory_space<vmem>>, vector<1x18x64xf32>,
    %cst_38 = arith.constant dense<0.000000e+00> : vector<64xf32>
    %54 = vector.multi_reduction <add>, %50, %cst_38 [0] : vector<18x64xf32> to vector<64xf32>
    %55 = vector.shape_cast %54 : vector<64xf32> to vector<1x64xf32>
    %c0_39 = arith.constant 0 : index
    %c0_40 = arith.constant 0 : index
    %c0_41 = arith.constant 0 : index
    %56 = vector.load %arg8[%c0_39, %c0_40, %c0_41] : memref<1x2x64xf32, #tpu.memory_space<vmem>>, vector<1x1x64xf32>
    %57 = vector.shape_cast %56 : vector<1x1x64xf32> to vector<1x64xf32>
    %58 = vector.shape_cast %55 : vector<1x64xf32> to vector<1x1x64xf32>
    tpu.vector_store %arg8[%c0_39, %c0_40, %c0_41], %58 {strides = array<i32>} : memref<1x2x64xf32, #tpu.memory_space<vmem>>, vector<1x1x64xf32>,
    %59 = arith.mulf %50, %50 : vector<18x64xf32>
    %cst_42 = arith.constant dense<0.000000e+00> : vector<64xf32>
    %60 = vector.multi_reduction <add>, %59, %cst_42 [0] : vector<18x64xf32> to vector<64xf32>
    %61 = vector.shape_cast %60 : vector<64xf32> to vector<1x64xf32>
    %c0_43 = arith.constant 0 : index
    %c1_44 = arith.constant 1 : index
    %c0_45 = arith.constant 0 : index
    %62 = vector.load %arg8[%c0_43, %c1_44, %c0_45] : memref<1x2x64xf32, #tpu.memory_space<vmem>>, vector<1x1x64xf32>
    %63 = vector.shape_cast %62 : vector<1x1x64xf32> to vector<1x64xf32>
    %64 = vector.shape_cast %61 : vector<1x64xf32> to vector<1x1x64xf32>
    tpu.vector_store %arg8[%c0_43, %c1_44, %c0_45], %64 {strides = array<i32>} : memref<1x2x64xf32, #tpu.memory_space<vmem>>, vector<1x1x64xf32>,
    return
  }
  func.func @transform_0(%arg0: i32) -> (i32, i32, i32) {
    %c0_i32 = arith.constant 0 : i32
    %c0_i32_0 = arith.constant 0 : i32
    %c0_i32_1 = arith.constant 0 : i32
    return %arg0, %c0_i32, %c0_i32_0 : i32, i32, i32
  }
  func.func @transform_1(%arg0: i32) -> (i32, i32) {
    %c0_i32 = arith.constant 0 : i32
    %c0_i32_0 = arith.constant 0 : i32
    %c0_i32_1 = arith.constant 0 : i32
    return %c0_i32, %c0_i32_0 : i32, i32
  }
  func.func @transform_2(%arg0: i32) -> (i32, i32) {
    %c0_i32 = arith.constant 0 : i32
    %c0_i32_0 = arith.constant 0 : i32
    %c0_i32_1 = arith.constant 0 : i32
    return %c0_i32, %c0_i32_0 : i32, i32
  }
  func.func @transform_3(%arg0: i32) -> (i32, i32, i32) {
    %c0_i32 = arith.constant 0 : i32
    %c0_i32_0 = arith.constant 0 : i32
    %c0_i32_1 = arith.constant 0 : i32
    %c0_i32_2 = arith.constant 0 : i32
    return %c0_i32, %c0_i32_0, %c0_i32_1 : i32, i32, i32
  }
  func.func @transform_4(%arg0: i32) -> (i32, i32, i32) {
    %c0_i32 = arith.constant 0 : i32
    %c0_i32_0 = arith.constant 0 : i32
    %c0_i32_1 = arith.constant 0 : i32
    %c0_i32_2 = arith.constant 0 : i32
    return %c0_i32, %c0_i32_0, %c0_i32_1 : i32, i32, i32
  }
  func.func @transform_5(%arg0: i32) -> (i32, i32) {
    %c0_i32 = arith.constant 0 : i32
    %c0_i32_0 = arith.constant 0 : i32
    %c0_i32_1 = arith.constant 0 : i32
    return %c0_i32, %c0_i32_0 : i32, i32
  }
  func.func @transform_6(%arg0: i32) -> (i32, i32, i32) {
    %c0_i32 = arith.constant 0 : i32
    %c0_i32_0 = arith.constant 0 : i32
    %c0_i32_1 = arith.constant 0 : i32
    return %arg0, %c0_i32, %c0_i32_0 : i32, i32, i32
  }
  func.func @transform_7(%arg0: i32) -> (i32, i32, i32) {
    %c0_i32 = arith.constant 0 : i32
    %c0_i32_0 = arith.constant 0 : i32
    %c0_i32_1 = arith.constant 0 : i32
    return %arg0, %c0_i32, %c0_i32_0 : i32, i32, i32
  }
}

module attributes {stable_mosaic.version = 11 : i64} {
  func.func @bn_relu_kernel(%arg0: i32, %arg1: memref<1x18x64xf32, #tpu.memory_space<vmem>>, %arg2: memref<1x64xf32, #tpu.memory_space<vmem>>, %arg3: memref<1x64xf32, #tpu.memory_space<vmem>>, %arg4: memref<1x18x64xf32, #tpu.memory_space<vmem>>) attributes {dimension_semantics = [#tpu.dimension_semantics<parallel>], iteration_bounds = array<i64: 2>, scalar_prefetch = 0 : i64, scratch_operands = 0 : i64, tpu.core_type = #tpu.core_type<tc>, window_params = [{transform_indices = @transform_0, window_bounds = array<i64: 1, 18, 64>}, {pipeline_mode = #tpu.pipeline_mode<synchronous>, transform_indices = @transform_1, window_bounds = array<i64: 1, 64>}, {pipeline_mode = #tpu.pipeline_mode<synchronous>, transform_indices = @transform_2, window_bounds = array<i64: 1, 64>}, {transform_indices = @transform_3, window_bounds = array<i64: 1, 18, 64>}]} {
    %c0 = arith.constant 0 : index
    %c0_0 = arith.constant 0 : index
    %c0_1 = arith.constant 0 : index
    %0 = vector.load %arg1[%c0, %c0_0, %c0_1] : memref<1x18x64xf32, #tpu.memory_space<vmem>>, vector<1x18x64xf32>
    %1 = vector.shape_cast %0 : vector<1x18x64xf32> to vector<18x64xf32>
    %c0_2 = arith.constant 0 : index
    %c0_3 = arith.constant 0 : index
    %2 = vector.load %arg2[%c0_2, %c0_3] : memref<1x64xf32, #tpu.memory_space<vmem>>, vector<1x64xf32>
    %3 = vector.broadcast %2 : vector<1x64xf32> to vector<18x64xf32>
    %4 = arith.mulf %1, %3 : vector<18x64xf32>
    %c0_4 = arith.constant 0 : index
    %c0_5 = arith.constant 0 : index
    %5 = vector.load %arg3[%c0_4, %c0_5] : memref<1x64xf32, #tpu.memory_space<vmem>>, vector<1x64xf32>
    %6 = vector.broadcast %5 : vector<1x64xf32> to vector<18x64xf32>
    %7 = arith.addf %4, %6 : vector<18x64xf32>
    %cst = arith.constant 0.000000e+00 : f32
    %8 = vector.broadcast %cst : f32 to vector<18x64xf32>
    %9 = arith.maximumf %7, %8 : vector<18x64xf32>
    %c0_6 = arith.constant 0 : index
    %c0_7 = arith.constant 0 : index
    %c0_8 = arith.constant 0 : index
    %10 = vector.load %arg4[%c0_6, %c0_7, %c0_8] : memref<1x18x64xf32, #tpu.memory_space<vmem>>, vector<1x18x64xf32>
    %11 = vector.shape_cast %10 : vector<1x18x64xf32> to vector<18x64xf32>
    %12 = vector.shape_cast %9 : vector<18x64xf32> to vector<1x18x64xf32>
    tpu.vector_store %arg4[%c0_6, %c0_7, %c0_8], %12 {strides = array<i32>} : memref<1x18x64xf32, #tpu.memory_space<vmem>>, vector<1x18x64xf32>,
    return
  }
  func.func @transform_0(%arg0: i32) -> (i32, i32, i32) {
    %c0_i32 = arith.constant 0 : i32
    %c0_i32_0 = arith.constant 0 : i32
    %c0_i32_1 = arith.constant 0 : i32
    return %arg0, %c0_i32, %c0_i32_0 : i32, i32, i32
  }
  func.func @transform_1(%arg0: i32) -> (i32, i32) {
    %c0_i32 = arith.constant 0 : i32
    %c0_i32_0 = arith.constant 0 : i32
    %c0_i32_1 = arith.constant 0 : i32
    return %c0_i32, %c0_i32_0 : i32, i32
  }
  func.func @transform_2(%arg0: i32) -> (i32, i32) {
    %c0_i32 = arith.constant 0 : i32
    %c0_i32_0 = arith.constant 0 : i32
    %c0_i32_1 = arith.constant 0 : i32
    return %c0_i32, %c0_i32_0 : i32, i32
  }
  func.func @transform_3(%arg0: i32) -> (i32, i32, i32) {
    %c0_i32 = arith.constant 0 : i32
    %c0_i32_0 = arith.constant 0 : i32
    %c0_i32_1 = arith.constant 0 : i32
    return %arg0, %c0_i32, %c0_i32_0 : i32, i32, i32
  }
}

</mosaic_0001>

<bundles_post_ra>
// kernel: tile.33
= control target key start
LH: loop header
LB: loop body
LE: loop exit
PB: predicated region body
PF: predicated region fallthrough
CT: control target
= control target key end

     0   :  { %s28_s0 = inlined_call_operand.vmem [shape: f32[4], index: 0, kind: input, shape index: {}]   ;;  %s29_s1 = inlined_call_operand.vmem [shape: f32[16,4], index: 1, kind: output, shape index: {}]  }
   0x1   :  { %v4_v0 = vld [vmem:[%s28_s0] ss:$0 sm:$0xff] }
   0x2   :  { %5 = vst [vmem:[%s29_s1] sm:$0xff] %v4_v0  ;;  %8 = vst [vmem:[%s29_s1 + $0x8] sm:$0xff] %v4_v0 }

// kernel: tile.34
= control target key start
LH: loop header
LB: loop body
LE: loop exit
PB: predicated region body
PF: predicated region fallthrough
CT: control target
= control target key end

     0   :  { %s133_s10 = smov 60   ;;  %s134_s11 = smov 52   ;;  %vm3_vm0 = vcmask 31744   ;;  %vm9_vm1 = vcmask 523744   ;;  %vm15_vm2 = vcmask 490944   ;;  %vm21_vm3 = vcmask 458144   ;;  %s209_s0 = inlined_call_operand.vmem [shape: f32[16,4], index: 0, kind: input, shape index: {}]   ;;  %s210_s1 = inlined_call_operand.vmem [shape: f32[1,64], index: 1, kind: output, shape index: {}]  }
   0x1   :  { %v103_v0 = vld [vmem:[%s209_s0 + $0xf] sm:$0x1]   ;;  %v105_v1 = vld [vmem:[%s209_s0 + $0xd] sm:$0x1]   ;;  %v104_v2 = vld [vmem:[%s209_s0 + $0xe] sm:$0x1]  }
   0x2   :  { %7 = vrot.lane.b32.xlu0 %v103_v0, %s133_s10  ;;  %19 = vrot.lane.b32.xlu1 %v105_v1, %s134_s11  ;;  %v106_v3 = vld [vmem:[%s209_s0 + $0xc] sm:$0x1]   ;;  %s135_s16 = smov 56   ;;  %s136_s17 = smov 48   ;;  %v107_v4 = vld [vmem:[%s209_s0 + $0xb] sm:$0x1]  }
   0x3   :  { %v108_v5 = vld [vmem:[%s209_s0 + $0xa] sm:$0x1]   ;;  %v2_v6 = vld [vmem:[%s209_s0] sm:$0x1]   ;;  %s137_s24 = smov 44   ;;  %s138_s25 = smov 40  }
   0x4   :  { %4 = vst.msk [vmem:[#allocation0] sm:$0x1] %vm3_vm0, %v2_v6   ;;  %v109_v7 = vld [vmem:[%s209_s0 + $0x9] sm:$0x1]   ;;  %v110_v8 = vld [vmem:[%s209_s0 + $0x8] sm:$0x1]  }
   0x5   :  { %s139_s30 = smov 36   ;;  %s140_s2 = smov 32   ;;  %v111_v9 = vld [vmem:[%s209_s0 + $0x7] sm:$0x1]   ;;  %v112_v10 = vld [vmem:[%s209_s0 + $0x6] sm:$0x1]  }
   0x6   :  { %13 = vrot.lane.b32.xlu0 %v104_v2, %s135_s16  ;;  %25 = vrot.lane.b32.xlu1 %v106_v3, %s136_s17  ;;  %s141_s7 = smov 28   ;;  %s142_s8 = smov 24   ;;  %v113_v11 = vld [vmem:[%s209_s0 + $0x5] sm:$0x1]   ;;  %v114_v12 = vld [vmem:[%s209_s0 + $0x4] sm:$0x1]  }
   0x7   :  { %s143_s13 = smov 20   ;;  %s144_s14 = smov 16   ;;  %v115_v13 = vld [vmem:[%s209_s0 + $0x3] sm:$0x1]   ;;  %v116_v14 = vld [vmem:[%s209_s0 + $0x2] sm:$0x1]  }
   0x8   :  { %s145_s19 = smov 12   ;;  %s146_s20 = smov 8   ;;  %v117_v15 = vld [vmem:[%s209_s0 + $0x1] sm:$0x1]   ;;  %vm27_vm4 = vcmask 425344   ;;  %vm33_vm5 = vcmask 392544  }
   0x9   :  { %s147_s0 = smov 4   ;;  %vm39_vm6 = vcmask 359744   ;;  %vm45_vm7 = vcmask 326944   ;;  %vm51_vm8 = vcmask 294144   ;;  %vm57_vm9 = vcmask 261344  }
   0xa   :  { %31 = vrot.lane.b32.xlu0 %v107_v4, %s137_s24  ;;  %37 = vrot.lane.b32.xlu1 %v108_v5, %s138_s25  ;;  %vm63_vm10 = vcmask 228544   ;;  %vm69_vm11 = vcmask 195744   ;;  %vm75_vm12 = vcmask 162944   ;;  %vm81_vm13 = vcmask 130144  }
   0xb   :  { %vm87_vm14 = vcmask 97344   ;;  %vm93_vm15 = vcmask 64544  }
   0xe   :  { %43 = vrot.lane.b32.xlu0 %v109_v7, %s139_s30  ;;  %49 = vrot.lane.b32.xlu1 %v110_v8, %s140_s2 }
  0x12   :  { %55 = vrot.lane.b32.xlu0 %v111_v9, %s141_s7  ;;  %61 = vrot.lane.b32.xlu1 %v112_v10, %s142_s8 }
  0x16   :  { %67 = vrot.lane.b32.xlu0 %v113_v11, %s143_s13  ;;  %73 = vrot.lane.b32.xlu1 %v114_v12, %s144_s14 }
  0x1a   :  { %79 = vrot.lane.b32.xlu0 %v115_v13, %s145_s19  ;;  %85 = vrot.lane.b32.xlu1 %v116_v14, %s146_s20 }
  0x1e   :  { %91 = vrot.lane.b32.xlu0 %v117_v15, %s147_s0 }
  0x74   :  { %v8_v16 = vpop.permute.xlu0 %7   ;;  %v20_v17 = vpop.permute.xlu1 %19  }
  0x75   :  { %10 = vst.msk [vmem:[#allocation0] sm:$0x1] %vm9_vm1, %v8_v16  }
  0x78   :  { %v14_v18 = vpop.permute.xlu0 %13   ;;  %v26_v19 = vpop.permute.xlu1 %25  }
  0x79   :  { %16 = vst.msk [vmem:[#allocation0] sm:$0x1] %vm15_vm2, %v14_v18  }
  0x7a   :  { %22 = vst.msk [vmem:[#allocation0] sm:$0x1] %vm21_vm3, %v20_v17  }
  0x7b   :  { %28 = vst.msk [vmem:[#allocation0] sm:$0x1] %vm27_vm4, %v26_v19  }
  0x7c   :  { %v32_v20 = vpop.permute.xlu0 %31   ;;  %v38_v21 = vpop.permute.xlu1 %37  }
  0x7d   :  { %34 = vst.msk [vmem:[#allocation0] sm:$0x1] %vm33_vm5, %v32_v20  }
  0x7e   :  { %40 = vst.msk [vmem:[#allocation0] sm:$0x1] %vm39_vm6, %v38_v21  }
  0x80   :  { %v44_v22 = vpop.permute.xlu0 %43   ;;  %v50_v23 = vpop.permute.xlu1 %49  }
  0x81   :  { %46 = vst.msk [vmem:[#allocation0] sm:$0x1] %vm45_vm7, %v44_v22  }
  0x82   :  { %52 = vst.msk [vmem:[#allocation0] sm:$0x1] %vm51_vm8, %v50_v23  }
  0x84   :  { %v56_v24 = vpop.permute.xlu0 %55   ;;  %v62_v25 = vpop.permute.xlu1 %61  }
  0x85   :  { %58 = vst.msk [vmem:[#allocation0] sm:$0x1] %vm57_vm9, %v56_v24  }
  0x86   :  { %64 = vst.msk [vmem:[#allocation0] sm:$0x1] %vm63_vm10, %v62_v25  }
  0x88   :  { %v68_v26 = vpop.permute.xlu0 %67   ;;  %v74_v27 = vpop.permute.xlu1 %73  }
  0x89   :  { %70 = vst.msk [vmem:[#allocation0] sm:$0x1] %vm69_vm11, %v68_v26  }
  0x8a   :  { %76 = vst.msk [vmem:[#allocation0] sm:$0x1] %vm75_vm12, %v74_v27  }
  0x8c   :  { %v80_v28 = vpop.permute.xlu0 %79   ;;  %v86_v29 = vpop.permute.xlu1 %85  }
  0x8d   :  { %82 = vst.msk [vmem:[#allocation0] sm:$0x1] %vm81_vm13, %v80_v28  }
  0x8e   :  { %88 = vst.msk [vmem:[#allocation0] sm:$0x1] %vm87_vm14, %v86_v29  }
  0x90   :  { %v92_v30 = vpop.permute.xlu0 %91  }
  0x91   :  { %94 = vst.msk [vmem:[#allocation0] sm:$0x1] %vm93_vm15, %v92_v30  }
  0x98   :  { %v99_v31 = vld [vmem:[#allocation0] sm:$0x1] }
  0x99   :  { %102 = vst [vmem:[%s210_s1] sm:$0x1] %v99_v31 }

// kernel: up_pallas.3
= control target key start
LH: loop header
LB: loop body
LE: loop exit
PB: predicated region body
PF: predicated region fallthrough
CT: control target
= control target key end

     0   :  { %s2026_s30 = smov 0   ;;  %s2450_s0 = inlined_call_operand.vmem [shape: f32[2,8,32], index: 0, kind: input, shape index: {}]   ;;  %s2451_s1 = inlined_call_operand.vmem [shape: f32[2,18,64], index: 1, kind: input, shape index: {}]   ;;  %s2452_s2 = inlined_call_operand.vmem [shape: f32[18,8], index: 2, kind: input, shape index: {}]   ;;  %s2453_s3 = inlined_call_operand.vmem [shape: f32[32,64], index: 3, kind: input, shape index: {}]   ;;  %s2454_s4 = inlined_call_operand.vmem [shape: f32[3,64,64], index: 4, kind: input, shape index: {}]   ;;  %s2455_s5 = inlined_call_operand.vmem [shape: f32[3,64,64], index: 5, kind: input, shape index: {}]   ;;  %s2456_s6 = inlined_call_operand.vmem [shape: f32[3,18,18], index: 6, kind: input, shape index: {}]   ;;  %s2457_s7 = inlined_call_operand.vmem [shape: f32[1,64], index: 7, kind: input, shape index: {}]   ;;  %s2458_s8 = inlined_call_operand.vmem [shape: f32[2,18,64], index: 8, kind: output, shape index: {0}]   ;;  %s2459_s9 = inlined_call_operand.vmem [shape: f32[2,2,64], index: 9, kind: output, shape index: {1}]  }
   0x1 LB: > { %s1551_s10 = sadd.s32 4294967295, %s1972_s30   ;;  %p1555_p0 = scmp.ge.s32.totalorder %s1972_s30, 1  ;;  %s1972_s30 = sphi %s2026_s30, %s20_s30  }
   0x2   : > { %p299_p1 = scmp.lt.s32.totalorder %s1972_s30, 3 }
   0x4   : > { %p300_p2 = pnand %p1555_p0, %p299_p1 }
   0x5   : > { %p343_p3 = scmp.lt.s32.totalorder (!%p300_p2), %s1551_s10, 1 }
   0x6   : > { %303 = sbr.rel (%p300_p2) target bundleno = 1074 (0x432), region = 52 }
   0xb   : > { %v1974_v0 = vmov 0.0   ;;  %vm1975_vm0 = vmmov 0   ;;  %v458_v1 = vld [vmem:[%s2453_s3 + $0x18] sm:$0xff]  ;;  %s2461_s10 = smov (!%p343_p3, %s1551_s10), 1  ;;  %v457_v2 = vld [vmem:[%s2453_s3 + $0x10] sm:$0xff]  ;;  %v456_v3 = vld [vmem:[%s2453_s3 + $0x8] sm:$0xff] }
   0xc   : > { %1732 = vmatprep.subr.mxu0 %v1974_v0  ;;  %1734 = vmatprep.mubr.msk.f32.mxu0 %vm1975_vm0, %v1974_v0  ;;  %s1556_s15 = sshll.u32 %s2461_s10, 3  ;;  %v361_v4 = vld [vmem:[%s2452_s2] sm:$0xff]  ;;  %vm365_vm1 = vcmask 64512   ;;  %v362_v6 = vld [vmem:[%s2452_s2 + $0x8] sm:$0xff]  ;;  %v363_v7 = vld [vmem:[%s2452_s2 + $0x10] sm:$0x3] }
   0xd   : > { %1743 = vmatprep.subr.mxu1 %v1974_v0  ;;  %1751 = vmatprep.mubr.msk.f32.mxu1 %vm1975_vm0, %v1974_v0  ;;  %s346_s20 = scalar_lea.vmem %s2450_s0, %s1556_s15  ;;  %v455_v8 = vld [vmem:[%s2453_s3] sm:$0xff]  ;;  %v567_v9 = vld [vmem:[%s2455_s5 + $0x38] sm:$0xff]  ;;  %v566_v10 = vld [vmem:[%s2455_s5 + $0x30] sm:$0xff]  ;;  %vm459_vm2 = vcmask 261120   ;;  %s1955_s15 = smul.u32 24, %s2461_s10  ;;  %vm568_vm3 = vcmask 523264  }
   0xe   : > { %1744 = vmatpush3.msra.mxu1 %v458_v1  ;;  %v364_v5 = vld [vmem:[%s346_s20] sm:$0xff]  ;;  %v565_v11 = vld [vmem:[%s2455_s5 + $0x28] sm:$0xff]  ;;  %v563_v13 = vld [vmem:[%s2455_s5 + $0x18] sm:$0xff]  ;;  %vm942_vm4 = vcmask 1041408   ;;  %vm932_vm5 = vcmask 146432   ;;  %vm1423_vm8 = vcmask 517120  }
   0xf   : > { %1745 = vmatprep.subr.mxu1 %v1974_v0  ;;  %1733 = vmatpush3.msra.mxu0 %v364_v5  ;;  %v564_v12 = vld [vmem:[%s2455_s5 + $0x20] sm:$0xff]  ;;  %v562_v14 = vld [vmem:[%s2455_s5 + $0x10] sm:$0xff]  ;;  %v561_v15 = vld [vmem:[%s2455_s5 + $0x8] sm:$0xff]  ;;  %s351_s24 = scalar_lea.vmem %s2451_s1, %s1955_s15  ;;  %s356_s23 = scalar_lea.vmem %s2458_s8, %s1955_s15  ;;  %vm1436_vm9 = vcmask 516096  }
  0x10   : > { %1746 = vmatpush3.msra.mxu1 %v457_v2  ;;  %1735 = vmatmul.mubr.msk.f32.vlgmr.msra.gmra.mxu0 %vm365_vm1, %v361_v4  ;;  %v560_v16 = vld [vmem:[%s2455_s5] sm:$0xff]  ;;  %v559_v17 = vld [vmem:[%s2454_s4 + $0x38] sm:$0xff]  ;;  %v558_v19 = vld [vmem:[%s2454_s4 + $0x30] sm:$0xff]  ;;  %s1559_s15 = sshll.u32 %s2461_s10, 1 }
  0x11   : > { %1747 = vmatprep.subr.mxu1 %v1974_v0  ;;  %1737 = vmatprep.mubr.msk.f32.mxu0 %vm1975_vm0, %v1974_v0  ;;  %v557_v21 = vld [vmem:[%s2454_s4 + $0x28] sm:$0xff]  ;;  %v556_v23 = vld [vmem:[%s2454_s4 + $0x20] sm:$0xff]  ;;  %v555_v25 = vld [vmem:[%s2454_s4 + $0x18] sm:$0xff]  ;;  %s360_s26 = scalar_lea.vmem %s2459_s9, %s1559_s15 }
  0x12   : > { %1748 = vmatpush3.msra.mxu1 %v456_v3  ;;  %1760 = vmatprep.subr.mxu0 %v1974_v0  ;;  %v554_v27 = vld [vmem:[%s2454_s4 + $0x10] sm:$0xff]  ;;  %v553_v29 = vld [vmem:[%s2454_s4 + $0x8] sm:$0xff]  ;;  %v552_v30 = vld [vmem:[%s2454_s4] sm:$0xff] }
  0x13   : > { %1749 = vmatprep.subr.mxu1 %v1974_v0  ;;  %1761 = vmatpush3.msra.mxu0 %v567_v9  ;;  %v2155_v31 = vld [vmem:[%s351_s24] sm:$0xff]  ;;  %v1579_v32 = vld [vmem:[%s2454_s4 + $0x78] sm:$0xff]  ;;  %v1578_v33 = vld [vmem:[%s2454_s4 + $0x70] sm:$0xff] }
  0x14   : > { %1738 = vmatmul.mubr.msk.f32.gmra.mxu0 %vm365_vm1, %v362_v6  ;;  %1750 = vmatpush3.msra.mxu1 %v455_v8  ;;  %v1577_v34 = vld [vmem:[%s2454_s4 + $0x68] sm:$0xff]  ;;  %v1576_v36 = vld [vmem:[%s2454_s4 + $0x60] sm:$0xff]  ;;  %v1575_v37 = vld [vmem:[%s2454_s4 + $0x58] sm:$0xff] }
  0x15   : > { %1740 = vmatprep.mubr.msk.f32.mxu0 %vm1975_vm0, %v1974_v0  ;;  %1785 = vmatprep.subr.mxu1 %v1974_v0  ;;  %v2175_v35 = vld [vmem:[%s351_s24 + $0x8] sm:$0xff]  ;;  %v2188_v38 = vld [vmem:[%s351_s24 + $0x10] sm:$0x3]  ;;  %v1572_v41 = vld [vmem:[%s2454_s4 + $0x40] sm:$0xff] }
  0x16   : > { %1762 = vmatprep.subr.mxu0 %v1974_v0  ;;  %v1574_v39 = vld [vmem:[%s2454_s4 + $0x50] sm:$0xff]  ;;  %v1573_v40 = vld [vmem:[%s2454_s4 + $0x48] sm:$0xff]  ;;  %v1587_v42 = vld [vmem:[%s2455_s5 + $0x78] sm:$0xff] }
  0x17   : > { %1763 = vmatpush3.msra.mxu0 %v566_v10  ;;  %v1586_v44 = vld [vmem:[%s2455_s5 + $0x70] sm:$0xff]  ;;  %v1585_v46 = vld [vmem:[%s2455_s5 + $0x68] sm:$0xff]  ;;  %v1584_v48 = vld [vmem:[%s2455_s5 + $0x60] sm:$0xff] }
  0x18   : > { %1741 = vmatmul.mubr.msk.f32.gmra.mxu0 %vm365_vm1, %v363_v7  ;;  %1764 = vmatprep.subr.mxu0 %v1974_v0  ;;  %v1583_v50 = vld [vmem:[%s2455_s5 + $0x58] sm:$0xff]  ;;  %v1582_v52 = vld [vmem:[%s2455_s5 + $0x50] sm:$0xff]  ;;  %v1581_v54 = vld [vmem:[%s2455_s5 + $0x48] sm:$0xff] }
  0x19   : > { %1776 = vmatprep.mubr.msk.f32.mxu0 %vm1975_vm0, %v1974_v0  ;;  %1765 = vmatpush3.msra.mxu0 %v565_v11  ;;  %v1580_v55 = vld [vmem:[%s2455_s5 + $0x40] sm:$0xff] }
  0x1a   : > { %1766 = vmatprep.subr.mxu0 %v1974_v0 }
  0x1b   : > { %1767 = vmatpush3.msra.mxu0 %v564_v12 }
  0x1c   : > { %1768 = vmatprep.subr.mxu0 %v1974_v0 }
  0x1d   : > { %1769 = vmatpush3.msra.mxu0 %v563_v13 }
  0x1e   : > { %1770 = vmatprep.subr.mxu0 %v1974_v0 }
  0x1f   : > { %1771 = vmatpush3.msra.mxu0 %v562_v14  ;;  %v747_v14 = vld [vmem:[%s2456_s6] sm:$0xff] }
  0x20   : > { %1772 = vmatprep.subr.mxu0 %v1974_v0 }
  0x21   : > { %1773 = vmatpush3.msra.mxu0 %v561_v15  ;;  %v1612_v15 = vld [vmem:[%s2454_s4 + $0xb8] sm:$0xff] }
  0x22   : > { %1774 = vmatprep.subr.mxu0 %v1974_v0 }
  0x23   : > { %1775 = vmatpush3.msra.mxu0 %v560_v16 }
  0x24   : > { %1810 = vmatprep.subr.mxu0 %v1974_v0 }
  0xd0   : > { %v441_v18 = vpop.f32.mrf.mxu0 }
  0xd1   : > { %1752 = vmatmul.mubr.msk.f32.vlgmr.msra.gmra.mxu1 %vm459_vm2, %v441_v18  ;;  %v748_v18 = vld [vmem:[%s2456_s6 + $0x8] sm:$0xff] }
  0xd2   : > { %v1736_v20 = vpop.f32.mrf.mxu0  ;;  %1754 = vmatprep.mubr.msk.f32.mxu1 %vm1975_vm0, %v1974_v0  ;;  %1786 = vmatpush3.msra.mxu1 %v559_v17  ;;  %v1611_v17 = vld [vmem:[%s2454_s4 + $0xb0] sm:$0xff] }
  0xd3   : > { %1787 = vmatprep.subr.mxu1 %v1974_v0  ;;  %v1610_v20 = vld [vmem:[%s2454_s4 + $0xa8] sm:$0xff] }
  0xd4   : > { %v446_v22 = vpop.f32.mrf.mxu0  ;;  %1788 = vmatpush3.msra.mxu1 %v558_v19 }
  0xd5   : > { %1755 = vmatmul.mubr.msk.f32.gmra.mxu1 %vm459_vm2, %v446_v22  ;;  %1789 = vmatprep.subr.mxu1 %v1974_v0  ;;  %v1609_v22 = vld [vmem:[%s2454_s4 + $0xa0] sm:$0xff] }
  0xd6   : > { %v1739_v24 = vpop.f32.mrf.mxu0  ;;  %1757 = vmatprep.mubr.msk.f32.mxu1 %vm1975_vm0, %v1974_v0  ;;  %1790 = vmatpush3.msra.mxu1 %v557_v21 }
  0xd7   : > { %1791 = vmatprep.subr.mxu1 %v1974_v0 }
  0xd8   : > { %v451_v26 = vpop.f32.mrf.mxu0  ;;  %1792 = vmatpush3.msra.mxu1 %v556_v23  ;;  %v749_v23 = vld [vmem:[%s2456_s6 + $0x10] sm:$0x3] }
  0xd9   : > { %1758 = vmatmul.mubr.msk.f32.gmra.mxu1 %vm459_vm2, %v451_v26  ;;  %1793 = vmatprep.subr.mxu1 %v1974_v0 }
  0xda   : > { %v1742_v28 = vpop.f32.mrf.mxu0  ;;  %1794 = vmatpush3.msra.mxu1 %v555_v25  ;;  %1801 = vmatprep.mubr.msk.f32.mxu1 %vm1975_vm0, %v1974_v0  ;;  %v1608_v25 = vld [vmem:[%s2454_s4 + $0x98] sm:$0xff] }
  0xdb   : > { %1795 = vmatprep.subr.mxu1 %v1974_v0 }
  0xdc   : > { %1796 = vmatpush3.msra.mxu1 %v554_v27  ;;  %v1607_v27 = vld [vmem:[%s2454_s4 + $0x90] sm:$0xff] }
  0xdd   : > { %1797 = vmatprep.subr.mxu1 %v1974_v0 }
  0xde   : > { %1798 = vmatpush3.msra.mxu1 %v553_v29 }
  0xdf   : > { %1799 = vmatprep.subr.mxu1 %v1974_v0 }
  0xe0   : > { %1800 = vmatpush3.msra.mxu1 %v552_v30  ;;  %v1606_v30 = vld [vmem:[%s2454_s4 + $0x88] sm:$0xff] }
  0xe1   : > { %1835 = vmatprep.subr.mxu1 %v1974_v0  ;;  %1802 = vmatmul.mubr.msk.f32.vlgmr.msra.gmra.mxu1 %vm568_vm3, %v2155_v31 }
  0xe2   : > { %1836 = vmatpush3.msra.mxu1 %v1579_v32  ;;  %1804 = vmatprep.mubr.msk.f32.mxu1 %vm1975_vm0, %v1974_v0 }
  0xe3   : > { %1837 = vmatprep.subr.mxu1 %v1974_v0 }
  0xe4   : > { %1838 = vmatpush3.msra.mxu1 %v1578_v33  ;;  %v1605_v33 = vld [vmem:[%s2454_s4 + $0x80] sm:$0xff] }
  0xe5   : > { %1839 = vmatprep.subr.mxu1 %v1974_v0  ;;  %1805 = vmatmul.mubr.msk.f32.gmra.mxu1 %vm568_vm3, %v2175_v35 }
  0xe6   : > { %1840 = vmatpush3.msra.mxu1 %v1577_v34  ;;  %1807 = vmatprep.mubr.msk.f32.mxu1 %vm1975_vm0, %v1974_v0 }
  0xe7   : > { %1841 = vmatprep.subr.mxu1 %v1974_v0 }
  0xe8   : > { %1842 = vmatpush3.msra.mxu1 %v1576_v36  ;;  %v1594_v36 = vld [vmem:[%s2456_s6 + $0x18] sm:$0xff] }
  0xe9   : > { %1843 = vmatprep.subr.mxu1 %v1974_v0  ;;  %1808 = vmatmul.mubr.msk.f32.gmra.mxu1 %vm568_vm3, %v2188_v38 }
  0xea   : > { %1844 = vmatpush3.msra.mxu1 %v1575_v37  ;;  %1851 = vmatprep.mubr.msk.f32.mxu1 %vm1975_vm0, %v1974_v0  ;;  %v1620_v37 = vld [vmem:[%s2455_s5 + $0xb8] sm:$0xff] }
  0xeb   : > { %1845 = vmatprep.subr.mxu1 %v1974_v0 }
  0xec   : > { %1846 = vmatpush3.msra.mxu1 %v1574_v39  ;;  %v1619_v39 = vld [vmem:[%s2455_s5 + $0xb0] sm:$0xff] }
  0xed   : > { %1847 = vmatprep.subr.mxu1 %v1974_v0 }
  0xee   : > { %1848 = vmatpush3.msra.mxu1 %v1573_v40  ;;  %v1595_v40 = vld [vmem:[%s2456_s6 + $0x20] sm:$0xff] }
  0xef   : > { %1849 = vmatprep.subr.mxu1 %v1974_v0 }
  0xf0   : > { %1850 = vmatpush3.msra.mxu1 %v1572_v41  ;;  %v1618_v41 = vld [vmem:[%s2455_s5 + $0xa8] sm:$0xff] }
  0xf1   : > { %1852 = vmatmul.mubr.msk.f32.vlgmr.msra.gmra.mxu1 %vm568_vm3, %v2155_v31  ;;  %1875 = vmatprep.subr.mxu1 %v1974_v0 }
  0xf2   : > { %1854 = vmatprep.mubr.msk.f32.mxu1 %vm1975_vm0, %v1974_v0 }
  0xf5   : > { %1855 = vmatmul.mubr.msk.f32.gmra.mxu1 %vm568_vm3, %v2175_v35 }
  0xf6   : > { %1857 = vmatprep.mubr.msk.f32.mxu1 %vm1975_vm0, %v1974_v0 }
  0xf9   : > { %1858 = vmatmul.mubr.msk.f32.gmra.mxu1 %vm568_vm3, %v2188_v38 }
  0xfa   : > { %1881 = vmatprep.mubr.msk.f32.mxu1 %vm1975_vm0, %v1974_v0 }
 0x191   : > { %v2222_v43 = vpop.f32.mrf.mxu1 }
 0x192   : > { %1777 = vmatmul.mubr.msk.f32.vlgmr.msra.gmra.mxu0 %vm568_vm3, %v2222_v43 }
 0x193   : > { %1811 = vmatpush3.msra.mxu0 %v1587_v42  ;;  %v1753_v45 = vpop.f32.mrf.mxu1  ;;  %1779 = vmatprep.mubr.msk.f32.mxu0 %vm1975_vm0, %v1974_v0  ;;  %v1617_v42 = vld [vmem:[%s2455_s5 + $0xa0] sm:$0xff] }
 0x194   : > { %1812 = vmatprep.subr.mxu0 %v1974_v0  ;;  %v1615_v45 = vld [vmem:[%s2455_s5 + $0x90] sm:$0xff] }
 0x195   : > { %1813 = vmatpush3.msra.mxu0 %v1586_v44  ;;  %v2235_v47 = vpop.f32.mrf.mxu1  ;;  %v1616_v44 = vld [vmem:[%s2455_s5 + $0x98] sm:$0xff] }
 0x196   : > { %1814 = vmatprep.subr.mxu0 %v1974_v0  ;;  %1780 = vmatmul.mubr.msk.f32.gmra.mxu0 %vm568_vm3, %v2235_v47 }
 0x197   : > { %1815 = vmatpush3.msra.mxu0 %v1585_v46  ;;  %v1756_v49 = vpop.f32.mrf.mxu1  ;;  %1782 = vmatprep.mubr.msk.f32.mxu0 %vm1975_vm0, %v1974_v0  ;;  %v1613_v46 = vld [vmem:[%s2455_s5 + $0x80] sm:$0xff] }
 0x198   : > { %1816 = vmatprep.subr.mxu0 %v1974_v0 }
 0x199   : > { %1817 = vmatpush3.msra.mxu0 %v1584_v48  ;;  %v2249_v51 = vpop.f32.mrf.mxu1 }
 0x19a   : > { %1818 = vmatprep.subr.mxu0 %v1974_v0  ;;  %1783 = vmatmul.mubr.msk.f32.gmra.mxu0 %vm568_vm3, %v2249_v51 }
 0x19b   : > { %1819 = vmatpush3.msra.mxu0 %v1583_v50  ;;  %v1759_v53 = vpop.f32.mrf.mxu1  ;;  %1826 = vmatprep.mubr.msk.f32.mxu0 %vm1975_vm0, %v1974_v0 }
 0x19c   : > { %1820 = vmatprep.subr.mxu0 %v1974_v0 }
 0x19d   : > { %1821 = vmatpush3.msra.mxu0 %v1582_v52 }
 0x19e   : > { %1822 = vmatprep.subr.mxu0 %v1974_v0 }
 0x19f   : > { %1823 = vmatpush3.msra.mxu0 %v1581_v54 }
 0x1a0   : > { %1824 = vmatprep.subr.mxu0 %v1974_v0 }
 0x1a1   : > { %1825 = vmatpush3.msra.mxu0 %v1580_v55  ;;  %v733_v56 = vpop.f32.mrf.mxu1 }
 0x1a2   : > { %1827 = vmatmul.mubr.msk.f32.vlgmr.msra.gmra.mxu0 %vm568_vm3, %v2222_v43  ;;  %1860 = vmatprep.subr.mxu0 %v1974_v0 }
 0x1a3   : > { %1829 = vmatprep.mubr.msk.f32.mxu0 %vm1975_vm0, %v1974_v0  ;;  %v1803_v57 = vpop.f32.mrf.mxu1 }
 0x1a5   : > { %v738_v58 = vpop.f32.mrf.mxu1 }
 0x1a6   : > { %1830 = vmatmul.mubr.msk.f32.gmra.mxu0 %vm568_vm3, %v2235_v47 }
 0x1a7   : > { %1832 = vmatprep.mubr.msk.f32.mxu0 %vm1975_vm0, %v1974_v0  ;;  %v1806_v59 = vpop.f32.mrf.mxu1 }
 0x1a9   : > { %v743_v60 = vpop.f32.mrf.mxu1 }
 0x1aa   : > { %1833 = vmatmul.mubr.msk.f32.gmra.mxu0 %vm568_vm3, %v2249_v51 }
 0x1ab   : > { %1866 = vmatprep.mubr.msk.f32.mxu0 %vm1975_vm0, %v1974_v0  ;;  %v1809_v61 = vpop.f32.mrf.mxu1 }
 0x1b1   : > { %v914_v62 = vpop.f32.mrf.mxu1 }
 0x1b3   : > { %v1853_v63 = vpop.f32.mrf.mxu1 }
 0x1b5   : > { %v919_v1 = vpop.f32.mrf.mxu1 }
 0x1b7   : > { %v1856_v2 = vpop.f32.mrf.mxu1 }
 0x1b9   : > { %v924_v3 = vpop.f32.mrf.mxu1 }
 0x1bb   : > { %v1859_v4 = vpop.f32.mrf.mxu1 }
 0x252   : > { %v644_v5 = vpop.f32.mrf.mxu0 }
 0x253   : > { %v734_v13 = vadd.f32 %v733_v56, %v644_v5 }
 0x254   : > { %v1778_v6 = vpop.f32.mrf.mxu0 }
 0x256   : > { %v649_v7 = vpop.f32.mrf.mxu0 }
 0x257   : > { %v739_v12 = vadd.f32 %v738_v58, %v649_v7 }
 0x258   : > { %v1781_v8 = vpop.f32.mrf.mxu0 }
 0x25a   : > { %v654_v9 = vpop.f32.mrf.mxu0 }
 0x25b   : > { %v744_v10 = vadd.f32 %v743_v60, %v654_v9 }
 0x25c   : > { %v1784_v11 = vpop.f32.mrf.mxu0 }
 0x25d   : > { %1876 = vmatpush3.msk.msra.mxu1 %vm942_vm4, %v744_v10 }
 0x25e   : > { %1877 = vmatprep.subr.mxu1 %v1974_v0 }
 0x25f   : > { %1878 = vmatpush3.msra.mxu1 %v739_v12  ;;  %v1627_v12 = vld [vmem:[%s2456_s6 + $0x30] sm:$0xff] }
 0x260   : > { %1879 = vmatprep.subr.mxu1 %v1974_v0 }
 0x261   : > { %1880 = vmatpush3.msra.mxu1 %v734_v13  ;;  %v1628_v13 = vld [vmem:[%s2456_s6 + $0x38] sm:$0xff] }
 0x262   : > { %v834_v16 = vpop.f32.mrf.mxu0  ;;  %1915 = vmatprep.subr.mxu1 %v1974_v0  ;;  %1882 = vmatmul.mubr.msk.f32.vlgmr.msra.gmra.mxu1 %vm932_vm5, %v747_v14  ;;  %v1629_v14 = vld [vmem:[%s2456_s6 + $0x40] sm:$0x3] }
 0x263   : > { %1916 = vmatpush3.msra.mxu1 %v1612_v15  ;;  %1884 = vmatprep.mubr.msk.f32.mxu1 %vm1975_vm0, %v1974_v0  ;;  %v915_v34 = vadd.f32 %v914_v62, %v834_v16  ;;  %v1405_v15 = vlaneseq }
 0x264   : > { %v1828_v19 = vpop.f32.mrf.mxu0  ;;  %1917 = vmatprep.subr.mxu1 %v1974_v0 }
 0x265   : > { %1918 = vmatpush3.msra.mxu1 %v1611_v17  ;;  %v1406_v16 = vshrl.u32 %v1405_v15, 7 }
 0x266   : > { %v839_v21 = vpop.f32.mrf.mxu0  ;;  %1919 = vmatprep.subr.mxu1 %v1974_v0  ;;  %1885 = vmatmul.mubr.msk.f32.gmra.mxu1 %vm932_vm5, %v748_v18  ;;  %v1634_v18 = vld [vmem:[%s2457_s7] ss:$0 sm:$0xff] }
 0x267   : > { %1920 = vmatpush3.msra.mxu1 %v1610_v20  ;;  %1887 = vmatprep.mubr.msk.f32.mxu1 %vm1975_vm0, %v1974_v0  ;;  %v920_v32 = vadd.f32 %v919_v1, %v839_v21  ;;  %vm1409_vm6 = vcmp.ge.s32.totalorder %v1406_v16, 1 }
 0x268   : > { %v1831_v24 = vpop.f32.mrf.mxu0  ;;  %1921 = vmatprep.subr.mxu1 %v1974_v0 }
 0x269   : > { %1922 = vmatpush3.msra.mxu1 %v1609_v22 }
 0x26a   : > { %v844_v26 = vpop.f32.mrf.mxu0  ;;  %1923 = vmatprep.subr.mxu1 %v1974_v0  ;;  %1888 = vmatmul.mubr.msk.f32.gmra.mxu1 %vm932_vm5, %v749_v23 }
 0x26b   : > { %v925_v28 = vadd.f32 %v924_v3, %v844_v26  ;;  %1924 = vmatpush3.msra.mxu1 %v1608_v25  ;;  %1931 = vmatprep.mubr.msk.f32.mxu1 %vm1975_vm0, %v1974_v0  ;;  %v1408_v25 = vadd.s32 16, %v1406_v16 }
 0x26c   : > { %v1834_v29 = vpop.f32.mrf.mxu0  ;;  %1925 = vmatprep.subr.mxu1 %v1974_v0 }
 0x26d   : > { %1861 = vmatpush3.msk.msra.mxu0 %vm942_vm4, %v925_v28  ;;  %1926 = vmatpush3.msra.mxu1 %v1607_v27  ;;  %vm1414_vm7 = vcmp.le.s32.totalorder %v1408_v25, 16 }
 0x26e   : > { %1862 = vmatprep.subr.mxu0 %v1974_v0  ;;  %1927 = vmatprep.subr.mxu1 %v1974_v0 }
 0x26f   : > { %1863 = vmatpush3.msra.mxu0 %v920_v32  ;;  %1928 = vmatpush3.msra.mxu1 %v1606_v30 }
 0x270   : > { %1864 = vmatprep.subr.mxu0 %v1974_v0  ;;  %1929 = vmatprep.subr.mxu1 %v1974_v0 }
 0x271   : > { %1865 = vmatpush3.msra.mxu0 %v915_v34  ;;  %1930 = vmatpush3.msra.mxu1 %v1605_v33 }
 0x272   : > { %1867 = vmatmul.mubr.msk.f32.vlgmr.msra.gmra.mxu0 %vm932_vm5, %v1594_v36  ;;  %1890 = vmatprep.subr.mxu0 %v1974_v0 }
 0x273   : > { %1891 = vmatpush3.msra.mxu0 %v1620_v37  ;;  %1869 = vmatprep.mubr.msk.f32.mxu0 %vm1975_vm0, %v1974_v0 }
 0x274   : > { %1892 = vmatprep.subr.mxu0 %v1974_v0  ;;  %1932 = vmatmul.mubr.msk.f32.vlgmr.msra.gmra.mxu1 %vm568_vm3, %v2155_v31  ;;  %v1596_v31 = vld [vmem:[%s2456_s6 + $0x28] sm:$0x3] }
 0x275   : > { %1893 = vmatpush3.msra.mxu0 %v1619_v39  ;;  %1934 = vmatprep.mubr.msk.f32.mxu1 %vm1975_vm0, %v1974_v0 }
 0x276   : > { %1894 = vmatprep.subr.mxu0 %v1974_v0  ;;  %1870 = vmatmul.mubr.msk.f32.gmra.mxu0 %vm932_vm5, %v1595_v40 }
 0x277   : > { %1895 = vmatpush3.msra.mxu0 %v1618_v41  ;;  %1872 = vmatprep.mubr.msk.f32.mxu0 %vm1975_vm0, %v1974_v0 }
 0x278   : > { %1896 = vmatprep.subr.mxu0 %v1974_v0  ;;  %1935 = vmatmul.mubr.msk.f32.gmra.mxu1 %vm568_vm3, %v2175_v35  ;;  %v1614_v35 = vld [vmem:[%s2455_s5 + $0x88] sm:$0xff] }
 0x279   : > { %1897 = vmatpush3.msra.mxu0 %v1617_v42  ;;  %1937 = vmatprep.mubr.msk.f32.mxu1 %vm1975_vm0, %v1974_v0 }
 0x27a   : > { %1898 = vmatprep.subr.mxu0 %v1974_v0  ;;  %1873 = vmatmul.mubr.msk.f32.gmra.mxu0 %vm932_vm5, %v1596_v31 }
 0x27b   : > { %1899 = vmatpush3.msra.mxu0 %v1616_v44  ;;  %1906 = vmatprep.mubr.msk.f32.mxu0 %vm1975_vm0, %v1974_v0 }
 0x27c   : > { %1900 = vmatprep.subr.mxu0 %v1974_v0  ;;  %1938 = vmatmul.mubr.msk.f32.gmra.mxu1 %vm568_vm3, %v2188_v38 }
 0x27d   : > { %1901 = vmatpush3.msra.mxu0 %v1615_v45 }
 0x27e   : > { %1902 = vmatprep.subr.mxu0 %v1974_v0 }
 0x27f   : > { %1903 = vmatpush3.msra.mxu0 %v1614_v35 }
 0x280   : > { %1904 = vmatprep.subr.mxu0 %v1974_v0 }
 0x281   : > { %1905 = vmatpush3.msra.mxu0 %v1613_v46 }
 0x282   : > { %1907 = vmatmul.mubr.msk.f32.vlgmr.msra.gmra.mxu0 %vm568_vm3, %v2222_v43  ;;  %1940 = vmatprep.subr.mxu0 %v1974_v0 }
 0x283   : > { %1909 = vmatprep.mubr.msk.f32.mxu0 %vm1975_vm0, %v1974_v0 }
 0x286   : > { %1910 = vmatmul.mubr.msk.f32.gmra.mxu0 %vm568_vm3, %v2235_v47 }
 0x287   : > { %1912 = vmatprep.mubr.msk.f32.mxu0 %vm1975_vm0, %v1974_v0 }
 0x28a   : > { %1913 = vmatmul.mubr.msk.f32.gmra.mxu0 %vm568_vm3, %v2249_v51 }
 0x28b   : > { %1946 = vmatprep.mubr.msk.f32.mxu0 %vm1975_vm0, %v1974_v0 }
 0x322   : > { %v1104_v38 = vpop.f32.mrf.mxu1 }
 0x324   : > { %v1883_v48 = vpop.f32.mrf.mxu1 }
 0x326   : > { %v1109_v43 = vpop.f32.mrf.mxu1 }
 0x328   : > { %v1886_v49 = vpop.f32.mrf.mxu1 }
 0x32a   : > { %v1114_v50 = vpop.f32.mrf.mxu1 }
 0x32c   : > { %v1889_v52 = vpop.f32.mrf.mxu1 }
 0x332   : > { %v1012_v53 = vpop.f32.mrf.mxu0 }
 0x333   : > { %v1105_v54 = vadd.f32 %v1104_v38, %v1012_v53 }
 0x334   : > { %v1868_v55 = vpop.f32.mrf.mxu0  ;;  %v1282_v56 = vpop.f32.mrf.mxu1 }
 0x336   : > { %v1017_v47 = vpop.f32.mrf.mxu0  ;;  %v1933_v57 = vpop.f32.mrf.mxu1 }
 0x337   : > { %v1110_v58 = vadd.f32 %v1109_v43, %v1017_v47 }
 0x338   : > { %v1871_v59 = vpop.f32.mrf.mxu0  ;;  %v1287_v60 = vpop.f32.mrf.mxu1 }
 0x33a   : > { %v1022_v61 = vpop.f32.mrf.mxu0  ;;  %v1936_v51 = vpop.f32.mrf.mxu1 }
 0x33b   : > { %v1115_v62 = vadd.f32 %v1114_v50, %v1022_v61 }
 0x33c   : > { %v1874_v63 = vpop.f32.mrf.mxu0  ;;  %v1292_v1 = vpop.f32.mrf.mxu1 }
 0x33e   : > { %v1939_v2 = vpop.f32.mrf.mxu1 }
 0x342   : > { %v1202_v3 = vpop.f32.mrf.mxu0 }
 0x343   : > { %v1283_v11 = vadd.f32 %v1282_v56, %v1202_v3 }
 0x344   : > { %v1908_v4 = vpop.f32.mrf.mxu0 }
 0x346   : > { %v1207_v5 = vpop.f32.mrf.mxu0 }
 0x347   : > { %v1288_v10 = vadd.f32 %v1287_v60, %v1207_v5 }
 0x348   : > { %v1911_v6 = vpop.f32.mrf.mxu0 }
 0x34a   : > { %v1212_v7 = vpop.f32.mrf.mxu0 }
 0x34b   : > { %v1293_v8 = vadd.f32 %v1292_v1, %v1212_v7 }
 0x34c   : > { %v1914_v9 = vpop.f32.mrf.mxu0 }
 0x34d   : > { %1941 = vmatpush3.msk.msra.mxu0 %vm942_vm4, %v1293_v8 }
 0x34e   : > { %1942 = vmatprep.subr.mxu0 %v1974_v0 }
 0x34f   : > { %1943 = vmatpush3.msra.mxu0 %v1288_v10 }
 0x350   : > { %1944 = vmatprep.subr.mxu0 %v1974_v0 }
 0x351   : > { %1945 = vmatpush3.msra.mxu0 %v1283_v11 }
 0x352   : > { %1947 = vmatmul.mubr.msk.f32.vlgmr.msra.gmra.mxu0 %vm932_vm5, %v1627_v12 }
 0x353   : > { %1949 = vmatprep.mubr.msk.f32.mxu0 %vm1975_vm0, %v1974_v0 }
 0x356   : > { %1950 = vmatmul.mubr.msk.f32.gmra.mxu0 %vm932_vm5, %v1628_v13 }
 0x357   : > { %1952 = vmatprep.mubr.msk.f32.mxu0 %vm1975_vm0, %v1974_v0 }
 0x35a   : > { %1953 = vmatmul.mubr.msk.f32.gmra.mxu0 %vm932_vm5, %v1629_v14 }
 0x412   : > { %v1378_v17 = vpop.f32.mrf.mxu0 }
 0x413   : > { %v1392_v19 = vadd.f32 %v1378_v17, %v1105_v54 }
 0x414   : > { %v1948_v20 = vpop.f32.mrf.mxu0 }
 0x415   : > { %v1402_v0 = vadd.f32 %v1634_v18, %v1392_v19 }
 0x416   : > { %v1383_v21 = vpop.f32.mrf.mxu0 }
 0x417   : > { %v1418_v22 = vsel %vm1409_vm6, %v1402_v0, 0.0  ;;  %v1393_v23 = vadd.f32 %v1383_v21, %v1110_v58 }
 0x418   : > { %1421 = vst.msk [vmem:[%s356_s23] sm:$0xff] %vm568_vm3, %v1418_v22  ;;  %v1951_v24 = vpop.f32.mrf.mxu0  ;;  %v1438_v26 = vmul.f32 %v1418_v22, %v1418_v22  ;;  %v1425_v29 = vsel %vm568_vm3, %v1418_v22, 0.0 }
 0x419   : > { %v1403_v27 = vadd.f32 %v1634_v18, %v1393_v23 }
 0x41a   : > { %v1388_v28 = vpop.f32.mrf.mxu0  ;;  %v1441_v37 = vsel %vm568_vm3, %v1438_v26, 0.0 }
 0x41b   : > { %1422 = vst.msk [vmem:[%s356_s23 + $0x8] sm:$0xff] %vm568_vm3, %v1403_v27  ;;  %v1426_v30 = vsel %vm568_vm3, %v1403_v27, 0.0  ;;  %v1439_v32 = vmul.f32 %v1403_v27, %v1403_v27  ;;  %v1394_v33 = vadd.f32 %v1388_v28, %v1115_v62 }
 0x41c   : > { %v1427_v34 = vadd.f32 %v1426_v30, %v1425_v29  ;;  %v1954_v36 = vpop.f32.mrf.mxu0 }
 0x41d   : > { %v1442_v39 = vsel %vm568_vm3, %v1439_v32, 0.0  ;;  %v1404_v40 = vadd.f32 %v1634_v18, %v1394_v33 }
 0x41e   : > { %v1443_v41 = vadd.f32 %v1442_v39, %v1441_v37 }
 0x41f   : > { %v1420_v42 = vsel %vm1414_vm7, %v1404_v40, 0.0 }
 0x420   : > { %1424 = vst.msk [vmem:[%s356_s23 + $0x10] sm:$0x3] %vm1423_vm8, %v1420_v42  ;;  %v1428_v31 = vsel %vm1423_vm8, %v1420_v42, 0.0  ;;  %v1440_v44 = vmul.f32 %v1420_v42, %v1420_v42 }
 0x421   : > { %v1429_v45 = vadd.f32 %v1428_v31, %v1427_v34 }
 0x422   : > { %v1444_v35 = vsel %vm1423_vm8, %v1440_v44, 0.0 }
 0x423   : > { %v1430_v46 = vrot.slane %v1429_v45, 4  ;;  %v1445_v38 = vadd.f32 %v1444_v35, %v1443_v41 }
 0x425   : > { %v1431_v48 = vadd.f32 %v1430_v46, %v1429_v45  ;;  %v1446_v43 = vrot.slane %v1445_v38, 4 }
 0x427   : > { %v1432_v49 = vrot.slane %v1431_v48, 2  ;;  %v1447_v50 = vadd.f32 %v1446_v43, %v1445_v38 }
 0x429   : > { %v1433_v52 = vadd.f32 %v1432_v49, %v1431_v48  ;;  %v1448_v53 = vrot.slane %v1447_v50, 2 }
 0x42b   : > { %v1434_v54 = vrot.slane %v1433_v52, 1  ;;  %v1449_v55 = vadd.f32 %v1448_v53, %v1447_v50 }
 0x42d   : > { %v1435_v56 = vadd.f32 %v1434_v54, %v1433_v52  ;;  %v1450_v47 = vrot.slane %v1449_v55, 1 }
 0x42f   : > { %1437 = vst.msk [vmem:[%s360_s26] sm:$0x1] %vm1436_vm9, %v1435_v56  ;;  %v1451_v57 = vadd.f32 %v1450_v47, %v1449_v55 }
 0x431   : > { %1452 = vst.msk [vmem:[%s360_s26 + $0x1] sm:$0x1] %vm1436_vm9, %v1451_v57 }
 0x432 PF: > { %s20_s30 = sadd.s32 1, %s1972_s30  }
 0x433   : > { %p17_p4 = scmp.ge.s32.totalorder %s20_s30, 4  }
 0x435   :  { %19 = sbr.rel (!%p17_p4) target bundleno = 1 (0x1), region = 103 }

// kernel: up_pallas.4
= control target key start
LH: loop header
LB: loop body
LE: loop exit
PB: predicated region body
PF: predicated region fallthrough
CT: control target
= control target key end

     0   :  { %s1319_s24 = smov 0   ;;  %s1581_s0 = inlined_call_operand.vmem [shape: f32[2,18,64], index: 0, kind: input, shape index: {}]   ;;  %s1582_s1 = inlined_call_operand.vmem [shape: f32[1,64], index: 1, kind: input, shape index: {}]   ;;  %s1583_s2 = inlined_call_operand.vmem [shape: f32[1,64], index: 2, kind: input, shape index: {}]   ;;  %s1584_s3 = inlined_call_operand.vmem [shape: f32[3,64,64], index: 3, kind: input, shape index: {}]   ;;  %s1585_s4 = inlined_call_operand.vmem [shape: f32[3,18,18], index: 4, kind: input, shape index: {}]   ;;  %s1586_s5 = inlined_call_operand.vmem [shape: f32[1,64], index: 5, kind: input, shape index: {}]   ;;  %s1587_s6 = inlined_call_operand.vmem [shape: f32[2,18,64], index: 6, kind: output, shape index: {0}]   ;;  %s1588_s7 = inlined_call_operand.vmem [shape: f32[2,2,64], index: 7, kind: output, shape index: {1}]  }
   0x1 LB: > { %s1031_s25 = sadd.s32 4294967295, %s1275_s24   ;;  %p1035_p0 = scmp.ge.s32.totalorder %s1275_s24, 1  ;;  %s1275_s24 = sphi %s1319_s24, %s18_s24  }
   0x2   : > { %p240_p1 = scmp.lt.s32.totalorder %s1275_s24, 3 }
   0x4   : > { %p241_p2 = pnand %p1035_p0, %p240_p1 }
   0x5   : > { %p276_p3 = scmp.lt.s32.totalorder (!%p241_p2), %s1031_s25, 1 }
   0x6   : > { %244 = sbr.rel (%p241_p2) target bundleno = 681 (0x2a9), region = 44 }
   0xb   : > { %v1051_v0 = vld [vmem:[%s1584_s3 + $0x78] sm:$0xff]  ;;  %v1277_v2 = vmov 0.0   ;;  %v1050_v3 = vld [vmem:[%s1584_s3 + $0x70] sm:$0xff]  ;;  %s1590_s25 = smov (!%p276_p3, %s1031_s25), 1  ;;  %v1049_v5 = vld [vmem:[%s1584_s3 + $0x68] sm:$0xff]  ;;  %v316_v7 = vlaneseq  ;;  %vm340_vm1 = vcmask 523264  }
   0xc   : > { %v339_v1 = vld [vmem:[%s1584_s3 + $0x38] sm:$0xff]  ;;  %1163 = vmatprep.subr.mxu1 %v1277_v2  ;;  %1138 = vmatprep.subr.mxu0 %v1277_v2  ;;  %v338_v4 = vld [vmem:[%s1584_s3 + $0x30] sm:$0xff]  ;;  %v337_v6 = vld [vmem:[%s1584_s3 + $0x28] sm:$0xff]  ;;  %s1258_s15 = smul.u32 24, %s1590_s25  ;;  %vm1278_vm2 = vmmov 0   ;;  %vm536_vm4 = vcmask 1041408  }
   0xd   : > { %1164 = vmatpush3.msra.mxu1 %v1051_v0  ;;  %1139 = vmatpush3.msra.mxu0 %v339_v1  ;;  %v1048_v8 = vld [vmem:[%s1584_s3 + $0x60] sm:$0xff]  ;;  %v1047_v11 = vld [vmem:[%s1584_s3 + $0x58] sm:$0xff]  ;;  %v1379_v17 = vshrl.u32 %v316_v7, 7  ;;  %v1046_v19 = vld [vmem:[%s1584_s3 + $0x50] sm:$0xff]  ;;  %vm526_vm5 = vcmask 146432   ;;  %vm915_vm6 = vcmask 517120  }
   0xe   : > { %1165 = vmatprep.subr.mxu1 %v1277_v2  ;;  %1140 = vmatprep.subr.mxu0 %v1277_v2  ;;  %v336_v9 = vld [vmem:[%s1584_s3 + $0x20] sm:$0xff]  ;;  %v335_v12 = vld [vmem:[%s1584_s3 + $0x18] sm:$0xff]  ;;  %s280_s30 = scalar_lea.vmem %s1581_s0, %s1258_s15  ;;  %v334_v20 = vld [vmem:[%s1584_s3 + $0x10] sm:$0xff]  ;;  %s285_s21 = scalar_lea.vmem %s1587_s6, %s1258_s15  ;;  %vm928_vm7 = vcmask 516096  }
   0xf   : > { %1166 = vmatpush3.msra.mxu1 %v1050_v3  ;;  %1141 = vmatpush3.msra.mxu0 %v338_v4  ;;  %v1039_v10 = vld [vmem:[%s1582_s1] ss:$0 sm:$0xff]  ;;  %v291_v15 = vld [vmem:[%s280_s30 + $0x8] sm:$0xff]  ;;  %v292_v18 = vld [vmem:[%s280_s30 + $0x10] sm:$0x3]  ;;  %vm320_vm0 = vcmp.ge.s32.totalorder %v1379_v17, 1 }
  0x10   : > { %1167 = vmatprep.subr.mxu1 %v1277_v2  ;;  %1142 = vmatprep.subr.mxu0 %v1277_v2  ;;  %v290_v13 = vld [vmem:[%s280_s30] sm:$0xff]  ;;  %v301_v22 = vmul.f32 %v1039_v10, %v291_v15  ;;  %v1045_v23 = vld [vmem:[%s1584_s3 + $0x48] sm:$0xff]  ;;  %v302_v25 = vmul.f32 %v1039_v10, %v292_v18  ;;  %v1415_v32 = vadd.s32 16, %v1379_v17  ;;  %v1055_v48 = vld [vmem:[%s1585_s4 + $0x18] sm:$0xff]  ;;  %s1038_s15 = sshll.u32 %s1590_s25, 1 }
  0x11   : > { %1168 = vmatpush3.msra.mxu1 %v1049_v5  ;;  %1143 = vmatpush3.msra.mxu0 %v337_v6  ;;  %v1040_v14 = vld [vmem:[%s1583_s2] ss:$0 sm:$0xff]  ;;  %v300_v16 = vmul.f32 %v1039_v10, %v290_v13  ;;  %v333_v24 = vld [vmem:[%s1584_s3 + $0x8] sm:$0xff]  ;;  %v1073_v50 = vld [vmem:[%s1584_s3 + $0xb8] sm:$0xff]  ;;  %s289_s26 = scalar_lea.vmem %s1588_s7, %s1038_s15 }
  0x12   : > { %1169 = vmatprep.subr.mxu1 %v1277_v2  ;;  %1144 = vmatprep.subr.mxu0 %v1277_v2  ;;  %v1044_v27 = vld [vmem:[%s1584_s3 + $0x40] sm:$0xff]  ;;  %v311_v29 = vadd.f32 %v1040_v14, %v301_v22  ;;  %v312_v31 = vadd.f32 %v1040_v14, %v302_v25  ;;  %vm325_vm3 = vcmp.le.s32.totalorder %v1415_v32, 16  ;;  %v1072_v51 = vld [vmem:[%s1584_s3 + $0xb0] sm:$0xff]  ;;  %v1071_v53 = vld [vmem:[%s1584_s3 + $0xa8] sm:$0xff] }
  0x13   : > { %1170 = vmatpush3.msra.mxu1 %v1048_v8  ;;  %1145 = vmatpush3.msra.mxu0 %v336_v9  ;;  %v310_v21 = vadd.f32 %v1040_v14, %v300_v16  ;;  %v332_v28 = vld [vmem:[%s1584_s3] sm:$0xff]  ;;  %v431_v54 = vld [vmem:[%s1585_s4 + $0x8] sm:$0xff]  ;;  %v1069_v57 = vld [vmem:[%s1584_s3 + $0x98] sm:$0xff] }
  0x14   : > { %1171 = vmatprep.subr.mxu1 %v1277_v2  ;;  %1146 = vmatprep.subr.mxu0 %v1277_v2  ;;  %v1423_v33 = vmax.f32 %v311_v29, 0.0  ;;  %v315_v34 = vmax.f32 %v312_v31, 0.0  ;;  %v430_v49 = vld [vmem:[%s1585_s4] sm:$0xff]  ;;  %v1057_v56 = vld [vmem:[%s1585_s4 + $0x28] sm:$0x3]  ;;  %v1068_v59 = vld [vmem:[%s1584_s3 + $0x90] sm:$0xff] }
  0x15   : > { %1172 = vmatpush3.msra.mxu1 %v1047_v11  ;;  %1147 = vmatpush3.msra.mxu0 %v335_v12  ;;  %v313_v26 = vmax.f32 %v310_v21, 0.0  ;;  %v1056_v52 = vld [vmem:[%s1585_s4 + $0x20] sm:$0xff]  ;;  %v432_v58 = vld [vmem:[%s1585_s4 + $0x10] sm:$0x3]  ;;  %v1067_v60 = vld [vmem:[%s1584_s3 + $0x88] sm:$0xff] }
  0x16   : > { %1173 = vmatprep.subr.mxu1 %v1277_v2  ;;  %1148 = vmatprep.subr.mxu0 %v1277_v2  ;;  %v1442_v35 = vsel %vm325_vm3, %v315_v34, 0.0  ;;  %v1070_v55 = vld [vmem:[%s1584_s3 + $0xa0] sm:$0xff]  ;;  %v1077_v21 = vld [vmem:[%s1585_s4 + $0x30] sm:$0xff]  ;;  %v1078_v22 = vld [vmem:[%s1585_s4 + $0x38] sm:$0xff] }
  0x17   : > { %1174 = vmatpush3.msra.mxu1 %v1046_v19  ;;  %1149 = vmatpush3.msra.mxu0 %v334_v20  ;;  %v1410_v30 = vsel %vm320_vm0, %v313_v26, 0.0  ;;  %v1066_v61 = vld [vmem:[%s1584_s3 + $0x80] sm:$0xff] }
  0x18   : > { %1175 = vmatprep.subr.mxu1 %v1277_v2  ;;  %1150 = vmatprep.subr.mxu0 %v1277_v2  ;;  %v1084_v25 = vld [vmem:[%s1586_s5] ss:$0 sm:$0xff] }
  0x19   : > { %1176 = vmatpush3.msra.mxu1 %v1045_v23  ;;  %1151 = vmatpush3.msra.mxu0 %v333_v24  ;;  %v1079_v23 = vld [vmem:[%s1585_s4 + $0x40] sm:$0x3] }
  0x1a   : > { %1177 = vmatprep.subr.mxu1 %v1277_v2  ;;  %1152 = vmatprep.subr.mxu0 %v1277_v2 }
  0x1b   : > { %1178 = vmatpush3.msra.mxu1 %v1044_v27  ;;  %1179 = vmatprep.mubr.msk.f32.mxu1 %vm1278_vm2, %v1277_v2 }
  0x1c   : > { %1153 = vmatpush3.msra.mxu0 %v332_v28  ;;  %1154 = vmatprep.mubr.msk.f32.mxu0 %vm1278_vm2, %v1277_v2 }
  0x1d   : > { %1180 = vmatmul.mubr.msk.f32.vlgmr.msra.gmra.mxu1 %vm340_vm1, %v1410_v30  ;;  %1155 = vmatmul.mubr.msk.f32.vlgmr.msra.gmra.mxu0 %vm340_vm1, %v1410_v30 }
  0x1e   : > { %1182 = vmatprep.mubr.msk.f32.mxu1 %vm1278_vm2, %v1277_v2  ;;  %1157 = vmatprep.mubr.msk.f32.mxu0 %vm1278_vm2, %v1277_v2 }
  0x1f   : > { %1188 = vmatprep.subr.mxu0 %v1277_v2  ;;  %1203 = vmatprep.subr.mxu1 %v1277_v2 }
  0x21   : > { %1183 = vmatmul.mubr.msk.f32.gmra.mxu1 %vm340_vm1, %v1423_v33  ;;  %1158 = vmatmul.mubr.msk.f32.gmra.mxu0 %vm340_vm1, %v1423_v33 }
  0x22   : > { %1185 = vmatprep.mubr.msk.f32.mxu1 %vm1278_vm2, %v1277_v2  ;;  %1160 = vmatprep.mubr.msk.f32.mxu0 %vm1278_vm2, %v1277_v2 }
  0x25   : > { %1186 = vmatmul.mubr.msk.f32.gmra.mxu1 %vm340_vm1, %v1442_v35  ;;  %1161 = vmatmul.mubr.msk.f32.gmra.mxu0 %vm340_vm1, %v1442_v35 }
  0x26   : > { %1194 = vmatprep.mubr.msk.f32.mxu0 %vm1278_vm2, %v1277_v2  ;;  %1209 = vmatprep.mubr.msk.f32.mxu1 %vm1278_vm2, %v1277_v2 }
  0xdd   : > { %v508_v36 = vpop.f32.mrf.mxu1  ;;  %v416_v37 = vpop.f32.mrf.mxu0 }
  0xdf   : > { %v1181_v38 = vpop.f32.mrf.mxu1  ;;  %v1156_v39 = vpop.f32.mrf.mxu0 }
  0xe1   : > { %v513_v40 = vpop.f32.mrf.mxu1  ;;  %v421_v41 = vpop.f32.mrf.mxu0 }
  0xe3   : > { %v1184_v42 = vpop.f32.mrf.mxu1  ;;  %v1159_v43 = vpop.f32.mrf.mxu0 }
  0xe5   : > { %v518_v44 = vpop.f32.mrf.mxu1  ;;  %v426_v45 = vpop.f32.mrf.mxu0 }
  0xe6   : > { %1189 = vmatpush3.msk.msra.mxu0 %vm536_vm4, %v518_v44  ;;  %1204 = vmatpush3.msk.msra.mxu1 %vm536_vm4, %v426_v45 }
  0xe7   : > { %v1187_v46 = vpop.f32.mrf.mxu1  ;;  %1190 = vmatprep.subr.mxu0 %v1277_v2  ;;  %1205 = vmatprep.subr.mxu1 %v1277_v2  ;;  %v1162_v47 = vpop.f32.mrf.mxu0 }
  0xe8   : > { %1191 = vmatpush3.msra.mxu0 %v513_v40  ;;  %1206 = vmatpush3.msra.mxu1 %v421_v41 }
  0xe9   : > { %1192 = vmatprep.subr.mxu0 %v1277_v2  ;;  %1207 = vmatprep.subr.mxu1 %v1277_v2 }
  0xea   : > { %1193 = vmatpush3.msra.mxu0 %v508_v36  ;;  %1208 = vmatpush3.msra.mxu1 %v416_v37 }
  0xeb   : > { %1195 = vmatmul.mubr.msk.f32.vlgmr.msra.gmra.mxu0 %vm526_vm5, %v1055_v48  ;;  %1218 = vmatprep.subr.mxu0 %v1277_v2 }
  0xec   : > { %1210 = vmatmul.mubr.msk.f32.vlgmr.msra.gmra.mxu1 %vm526_vm5, %v430_v49  ;;  %1219 = vmatpush3.msra.mxu0 %v1073_v50 }
  0xed   : > { %1220 = vmatprep.subr.mxu0 %v1277_v2  ;;  %1197 = vmatprep.mubr.msk.f32.mxu0 %vm1278_vm2, %v1277_v2 }
  0xee   : > { %1221 = vmatpush3.msra.mxu0 %v1072_v51  ;;  %1212 = vmatprep.mubr.msk.f32.mxu1 %vm1278_vm2, %v1277_v2 }
  0xef   : > { %1222 = vmatprep.subr.mxu0 %v1277_v2  ;;  %1198 = vmatmul.mubr.msk.f32.gmra.mxu0 %vm526_vm5, %v1056_v52 }
  0xf0   : > { %1223 = vmatpush3.msra.mxu0 %v1071_v53  ;;  %1213 = vmatmul.mubr.msk.f32.gmra.mxu1 %vm526_vm5, %v431_v54 }
  0xf1   : > { %1224 = vmatprep.subr.mxu0 %v1277_v2  ;;  %1200 = vmatprep.mubr.msk.f32.mxu0 %vm1278_vm2, %v1277_v2 }
  0xf2   : > { %1225 = vmatpush3.msra.mxu0 %v1070_v55  ;;  %1215 = vmatprep.mubr.msk.f32.mxu1 %vm1278_vm2, %v1277_v2 }
  0xf3   : > { %1226 = vmatprep.subr.mxu0 %v1277_v2  ;;  %1201 = vmatmul.mubr.msk.f32.gmra.mxu0 %vm526_vm5, %v1057_v56 }
  0xf4   : > { %1227 = vmatpush3.msra.mxu0 %v1069_v57  ;;  %1216 = vmatmul.mubr.msk.f32.gmra.mxu1 %vm526_vm5, %v432_v58 }
  0xf5   : > { %1228 = vmatprep.subr.mxu0 %v1277_v2  ;;  %1234 = vmatprep.mubr.msk.f32.mxu0 %vm1278_vm2, %v1277_v2 }
  0xf6   : > { %1229 = vmatpush3.msra.mxu0 %v1068_v59  ;;  %1243 = vmatprep.subr.mxu1 %v1277_v2 }
  0xf7   : > { %1230 = vmatprep.subr.mxu0 %v1277_v2  ;;  %1249 = vmatprep.mubr.msk.f32.mxu1 %vm1278_vm2, %v1277_v2 }
  0xf8   : > { %1231 = vmatpush3.msra.mxu0 %v1067_v60 }
  0xf9   : > { %1232 = vmatprep.subr.mxu0 %v1277_v2 }
  0xfa   : > { %1233 = vmatpush3.msra.mxu0 %v1066_v61 }
  0xfb   : > { %1235 = vmatmul.mubr.msk.f32.vlgmr.msra.gmra.mxu0 %vm340_vm1, %v1410_v30 }
  0xfc   : > { %1237 = vmatprep.mubr.msk.f32.mxu0 %vm1278_vm2, %v1277_v2 }
  0xff   : > { %1238 = vmatmul.mubr.msk.f32.gmra.mxu0 %vm340_vm1, %v1423_v33 }
 0x100   : > { %1240 = vmatprep.mubr.msk.f32.mxu0 %vm1278_vm2, %v1277_v2 }
 0x103   : > { %1241 = vmatmul.mubr.msk.f32.gmra.mxu0 %vm340_vm1, %v1442_v35 }
 0x1ab   : > { %v606_v62 = vpop.f32.mrf.mxu0 }
 0x1ac   : > { %v698_v63 = vpop.f32.mrf.mxu1 }
 0x1ad   : > { %v699_v0 = vadd.f32 %v698_v63, %v606_v62  ;;  %v1196_v1 = vpop.f32.mrf.mxu0 }
 0x1ae   : > { %v1211_v3 = vpop.f32.mrf.mxu1 }
 0x1af   : > { %v611_v4 = vpop.f32.mrf.mxu0 }
 0x1b0   : > { %v703_v5 = vpop.f32.mrf.mxu1 }
 0x1b1   : > { %v1199_v6 = vpop.f32.mrf.mxu0  ;;  %v704_v7 = vadd.f32 %v703_v5, %v611_v4 }
 0x1b2   : > { %v1214_v8 = vpop.f32.mrf.mxu1 }
 0x1b3   : > { %v616_v9 = vpop.f32.mrf.mxu0 }
 0x1b4   : > { %v708_v10 = vpop.f32.mrf.mxu1 }
 0x1b5   : > { %v1202_v11 = vpop.f32.mrf.mxu0  ;;  %v709_v12 = vadd.f32 %v708_v10, %v616_v9 }
 0x1b6   : > { %v1217_v13 = vpop.f32.mrf.mxu1 }
 0x1bb   : > { %v787_v14 = vpop.f32.mrf.mxu0 }
 0x1bd   : > { %v1236_v15 = vpop.f32.mrf.mxu0 }
 0x1bf   : > { %v792_v16 = vpop.f32.mrf.mxu0 }
 0x1c1   : > { %v1239_v18 = vpop.f32.mrf.mxu0 }
 0x1c3   : > { %v797_v19 = vpop.f32.mrf.mxu0 }
 0x1c4   : > { %1244 = vmatpush3.msk.msra.mxu1 %vm536_vm4, %v797_v19 }
 0x1c5   : > { %v1242_v20 = vpop.f32.mrf.mxu0  ;;  %1245 = vmatprep.subr.mxu1 %v1277_v2 }
 0x1c6   : > { %1246 = vmatpush3.msra.mxu1 %v792_v16 }
 0x1c7   : > { %1247 = vmatprep.subr.mxu1 %v1277_v2 }
 0x1c8   : > { %1248 = vmatpush3.msra.mxu1 %v787_v14 }
 0x1c9   : > { %1250 = vmatmul.mubr.msk.f32.vlgmr.msra.gmra.mxu1 %vm526_vm5, %v1077_v21 }
 0x1ca   : > { %1252 = vmatprep.mubr.msk.f32.mxu1 %vm1278_vm2, %v1277_v2 }
 0x1cd   : > { %1253 = vmatmul.mubr.msk.f32.gmra.mxu1 %vm526_vm5, %v1078_v22 }
 0x1ce   : > { %1255 = vmatprep.mubr.msk.f32.mxu1 %vm1278_vm2, %v1277_v2 }
 0x1d1   : > { %1256 = vmatmul.mubr.msk.f32.gmra.mxu1 %vm526_vm5, %v1079_v23 }
 0x289   : > { %v883_v24 = vpop.f32.mrf.mxu1 }
 0x28a   : > { %v897_v26 = vadd.f32 %v883_v24, %v699_v0 }
 0x28b   : > { %v1251_v27 = vpop.f32.mrf.mxu1 }
 0x28c   : > { %v907_v28 = vadd.f32 %v1084_v25, %v897_v26 }
 0x28d   : > { %v888_v2 = vpop.f32.mrf.mxu1 }
 0x28e   : > { %v910_v29 = vsel %vm320_vm0, %v907_v28, 0.0  ;;  %v898_v30 = vadd.f32 %v888_v2, %v704_v7 }
 0x28f   : > { %913 = vst.msk [vmem:[%s285_s21] sm:$0xff] %vm340_vm1, %v910_v29  ;;  %v1254_v31 = vpop.f32.mrf.mxu1  ;;  %v930_v33 = vmul.f32 %v910_v29, %v910_v29  ;;  %v917_v36 = vsel %vm340_vm1, %v910_v29, 0.0 }
 0x290   : > { %v908_v34 = vadd.f32 %v1084_v25, %v898_v30 }
 0x291   : > { %v893_v35 = vpop.f32.mrf.mxu1  ;;  %v933_v17 = vsel %vm340_vm1, %v930_v33, 0.0 }
 0x292   : > { %914 = vst.msk [vmem:[%s285_s21 + $0x8] sm:$0xff] %vm340_vm1, %v908_v34  ;;  %v918_v37 = vsel %vm340_vm1, %v908_v34, 0.0  ;;  %v931_v38 = vmul.f32 %v908_v34, %v908_v34  ;;  %v899_v39 = vadd.f32 %v893_v35, %v709_v12 }
 0x293   : > { %v919_v40 = vadd.f32 %v918_v37, %v917_v36  ;;  %v1257_v41 = vpop.f32.mrf.mxu1 }
 0x294   : > { %v934_v42 = vsel %vm340_vm1, %v931_v38, 0.0  ;;  %v909_v43 = vadd.f32 %v1084_v25, %v899_v39 }
 0x295   : > { %v935_v44 = vadd.f32 %v934_v42, %v933_v17 }
 0x296   : > { %v912_v45 = vsel %vm325_vm3, %v909_v43, 0.0 }
 0x297   : > { %916 = vst.msk [vmem:[%s285_s21 + $0x10] sm:$0x3] %vm915_vm6, %v912_v45  ;;  %v920_v46 = vsel %vm915_vm6, %v912_v45, 0.0  ;;  %v932_v47 = vmul.f32 %v912_v45, %v912_v45 }
 0x298   : > { %v921_v48 = vadd.f32 %v920_v46, %v919_v40 }
 0x299   : > { %v936_v49 = vsel %vm915_vm6, %v932_v47, 0.0 }
 0x29a   : > { %v922_v50 = vrot.slane %v921_v48, 4  ;;  %v937_v51 = vadd.f32 %v936_v49, %v935_v44 }
 0x29c   : > { %v923_v52 = vadd.f32 %v922_v50, %v921_v48  ;;  %v938_v53 = vrot.slane %v937_v51, 4 }
 0x29e   : > { %v924_v54 = vrot.slane %v923_v52, 2  ;;  %v939_v55 = vadd.f32 %v938_v53, %v937_v51 }
 0x2a0   : > { %v925_v56 = vadd.f32 %v924_v54, %v923_v52  ;;  %v940_v57 = vrot.slane %v939_v55, 2 }
 0x2a2   : > { %v926_v58 = vrot.slane %v925_v56, 1  ;;  %v941_v59 = vadd.f32 %v940_v57, %v939_v55 }
 0x2a4   : > { %v927_v32 = vadd.f32 %v926_v58, %v925_v56  ;;  %v942_v60 = vrot.slane %v941_v59, 1 }
 0x2a6   : > { %929 = vst.msk [vmem:[%s289_s26] sm:$0x1] %vm928_vm7, %v927_v32  ;;  %v943_v61 = vadd.f32 %v942_v60, %v941_v59 }
 0x2a8   : > { %944 = vst.msk [vmem:[%s289_s26 + $0x1] sm:$0x1] %vm928_vm7, %v943_v61 }
 0x2a9 PF: > { %s18_s24 = sadd.s32 1, %s1275_s24  }
 0x2aa   : > { %p15_p4 = scmp.ge.s32.totalorder %s18_s24, 4  }
 0x2ac   :  { %17 = sbr.rel (!%p15_p4) target bundleno = 1 (0x1), region = 90 }

// kernel: up_pallas.5
= control target key start
LH: loop header
LB: loop body
LE: loop exit
PB: predicated region body
PF: predicated region fallthrough
CT: control target
= control target key end

     0   :  { %s305_s12 = smov 0   ;;  %s328_s0 = inlined_call_operand.vmem [shape: f32[2,18,64], index: 0, kind: input, shape index: {}]   ;;  %s329_s1 = inlined_call_operand.vmem [shape: f32[1,64], index: 1, kind: input, shape index: {}]   ;;  %s330_s2 = inlined_call_operand.vmem [shape: f32[1,64], index: 2, kind: input, shape index: {}]   ;;  %s331_s3 = inlined_call_operand.vmem [shape: f32[2,18,64], index: 3, kind: output, shape index: {}]  }
   0x1 LB: > { %s257_s13 = sadd.s32 4294967295, %s283_s12   ;;  %p261_p0 = scmp.ge.s32.totalorder %s283_s12, 1  ;;  %s283_s12 = sphi %s305_s12, %s13_s12  }
   0x2   : > { %p137_p1 = scmp.lt.s32.totalorder %s283_s12, 3 }
   0x4   : > { %p138_p2 = pnand %p261_p0, %p137_p1 }
   0x5   : > { %p161_p3 = scmp.lt.s32.totalorder (!%p138_p2), %s257_s13, 1 }
   0x6   : > { %141 = sbr.rel (%p138_p2) target bundleno = 24 (0x18), region = 32 }
   0xb   : > { %s333_s13 = smov (!%p161_p3, %s257_s13), 1  ;;  %v264_v0 = vld [vmem:[%s329_s1] ss:$0 sm:$0xff]  ;;  %vm197_vm0 = vcmask 523264   ;;  %vm200_vm1 = vcmask 517120  }
   0xc   : > { %s268_s14 = smul.u32 24, %s333_s13  ;;  %v265_v1 = vld [vmem:[%s330_s2] ss:$0 sm:$0xff] }
   0xe   : > { %s165_s19 = scalar_lea.vmem %s328_s0, %s268_s14  ;;  %s170_s24 = scalar_lea.vmem %s331_s3, %s268_s14 }
   0xf   : > { %v171_v2 = vld [vmem:[%s165_s19] sm:$0xff]  ;;  %v172_v3 = vld [vmem:[%s165_s19 + $0x8] sm:$0xff]  ;;  %v173_v4 = vld [vmem:[%s165_s19 + $0x10] sm:$0x3] }
  0x10   : > { %v181_v5 = vmul.f32 %v264_v0, %v171_v2  ;;  %v182_v6 = vmul.f32 %v264_v0, %v172_v3  ;;  %v183_v7 = vmul.f32 %v264_v0, %v173_v4 }
  0x12   : > { %v191_v8 = vadd.f32 %v265_v1, %v181_v5  ;;  %v192_v9 = vadd.f32 %v265_v1, %v182_v6  ;;  %v193_v10 = vadd.f32 %v265_v1, %v183_v7 }
  0x14   : > { %v194_v11 = vmax.f32 %v191_v8, 0.0  ;;  %v195_v12 = vmax.f32 %v192_v9, 0.0  ;;  %v196_v13 = vmax.f32 %v193_v10, 0.0 }
  0x16   : > { %198 = vst.msk [vmem:[%s170_s24] sm:$0xff] %vm197_vm0, %v194_v11  ;;  %199 = vst.msk [vmem:[%s170_s24 + $0x8] sm:$0xff] %vm197_vm0, %v195_v12 }
  0x17   : > { %201 = vst.msk [vmem:[%s170_s24 + $0x10] sm:$0x3] %vm200_vm1, %v196_v13 }
  0x18 PF: > { %s13_s12 = sadd.s32 1, %s283_s12  }
  0x19   : > { %p10_p4 = scmp.ge.s32.totalorder %s13_s12, 4  }
  0x1b   :  { %12 = sbr.rel (!%p10_p4) target bundleno = 1 (0x1), region = 62 }

</bundles_post_ra>
